<compile_context>
chip_gen: v7x
topology: tpu7x:2x2x1
jax: 0.10.0
libtpu: 0.0.40
codegen_flags: <defaults>
</compile_context>

<pallas_src>
import functools

import jax
import jax.numpy as jnp
import numpy as np
from jax.experimental import pallas as pl
from jax.experimental.pallas import tpu as pltpu

LANE = 128        # lane width (last dim)
BF16_TILE = 16    # bf16 sublane-packed tile height


def _round_up(x, m):
    return ((x + m - 1) // m) * m


# ----------------------------------------------------------------------------
# Fused forward kernel: everything stays in VMEM / vregs.
# ----------------------------------------------------------------------------
def _fused_gnn_kernel(
    adj_ref, pool_ref, invc_ref, x_ref,
    g0w1_ref, g0b1_ref, g0w2_ref, g0b2_ref,
    ln0g_ref, ln0b_ref,
    g1w1_ref, g1b1_ref, g1w2_ref, g1b2_ref,
    ln1g_ref, ln1b_ref,
    g2w1_ref, g2b1_ref, g2w2_ref, g2b2_ref,
    hw1_ref, hb1_ref, hw2_ref, hb2_ref,
    emb_ref, logp_ref,
    *, hidden_dim, output_dim,
):
    f32 = jnp.float32
    bf16 = jnp.bfloat16

    # (A + I) in bf16 (0/1/2 exactly representable), loaded once for 3 layers.
    # At 128x128 bf16 this is ~8 vregs; at larger row tiles re-load per layer.
    adj = adj_ref[...]

    def gin(h_bf16, w1_ref, b1_ref, w2_ref, b2_ref):
        # GINConv (eps=0): Linear2(ReLU(Linear1((A + I) @ h)))
        agg = jnp.dot(adj, h_bf16, preferred_element_type=f32)
        z = jnp.dot(agg.astype(bf16), w1_ref[...], preferred_element_type=f32)
        z = jnp.maximum(z + b1_ref[...], 0.0)
        return jnp.dot(z.astype(bf16), w2_ref[...],
                       preferred_element_type=f32) + b2_ref[...]

    h_pad = emb_ref.shape[-1]
    feat_mask = (jax.lax.broadcasted_iota(jnp.int32, (1, h_pad), 1)
                 < hidden_dim).astype(f32)
    inv_h = f32(1.0 / hidden_dim)

    def relu_ln(h, g_ref, b_ref):
        # ReLU -> Dropout(identity at eval) -> LayerNorm over TRUE hidden dims.
        h = jnp.maximum(h, 0.0)
        mean = jnp.sum(h * feat_mask, axis=-1, keepdims=True) * inv_h
        ctr = (h - mean) * feat_mask
        var = jnp.sum(ctr * ctr, axis=-1, keepdims=True) * inv_h
        # padded gamma/beta are zero -> padded lanes stay exactly zero.
        return (h - mean) * jax.lax.rsqrt(var + 1e-5) * g_ref[...] + b_ref[...]

    # layer 0 (x already bf16 in HBM/VMEM)
    h = gin(x_ref[...], g0w1_ref, g0b1_ref, g0w2_ref, g0b2_ref)
    h = relu_ln(h, ln0g_ref, ln0b_ref)
    # layer 1
    h = gin(h.astype(bf16), g1w1_ref, g1b1_ref, g1w2_ref, g1b2_ref)
    h = relu_ln(h, ln1g_ref, ln1b_ref)
    # layer 2 (last conv output is `emb`, pre-ReLU).  NOTE: padded node rows
    # of emb carry bias-propagated values; the wrapper slices them away.
    emb = gin(h.astype(bf16), g2w1_ref, g2b1_ref, g2w2_ref, g2b2_ref)
    emb_ref[...] = emb

    # global_mean_pool(ReLU(emb)): exact 0/1 one-hot sum on the MXU, then a
    # single f32 VPU multiply by the inverse graph sizes (exact, unlike a
    # pre-divided bf16 pool matrix).
    pooled = jnp.dot(pool_ref[...], jnp.maximum(emb, 0.0).astype(bf16),
                     preferred_element_type=f32) * invc_ref[...]

    # post_mp: Linear -> Dropout(identity) -> Linear
    hh = jnp.dot(pooled.astype(bf16), hw1_ref[...],
                 preferred_element_type=f32) + hb1_ref[...]
    logits = jnp.dot(hh.astype(bf16), hw2_ref[...],
                     preferred_element_type=f32) + hb2_ref[...]

    # log_softmax over TRUE output classes (mask padded logits first).
    out_pad = logp_ref.shape[-1]
    out_mask = jax.lax.broadcasted_iota(jnp.int32, (1, out_pad), 1) < output_dim
    logits = jnp.where(out_mask, logits, -1e30)
    m = jnp.max(logits, axis=-1, keepdims=True)
    lse = jnp.log(jnp.sum(jnp.exp(logits - m), axis=-1, keepdims=True)) + m
    logp_ref[...] = logits - lse


# ----------------------------------------------------------------------------
# Wrapper: pad to TPU-friendly shapes, cast matmul operands to bf16,
# single pallas_call, slice outputs back to true shapes.
# ----------------------------------------------------------------------------
@functools.partial(jax.jit,
                   static_argnames=("hidden_dim", "output_dim", "num_graphs"))
def gnn_stack_graph_forward(params, x, adj_hat, pool_onehot, inv_counts, *,
                            hidden_dim, output_dim, num_graphs):
    n = x.shape[0]
    n_pad = adj_hat.shape[0]
    b_pad = pool_onehot.shape[0]
    in_pad = params["gin0_w1"].shape[0]
    h_pad = params["gin0_w1"].shape[1]
    out_pad = params["head_w2"].shape[1]

    # bf16 node features, padded only to the bf16 sublane multiple (16):
    # at demo shapes the kernel is DMA/launch bound, so fewer input bytes win.
    x_p = jnp.pad(x, ((0, n_pad - n), (0, in_pad - x.shape[1]))
                  ).astype(jnp.bfloat16)

    def bf(a):
        return a.astype(jnp.bfloat16)

    inputs = (
        adj_hat.astype(jnp.bfloat16),       # [N_pad, N_pad]  (A + I), bf16
        pool_onehot.astype(jnp.bfloat16),   # [B_pad, N_pad]  exact 0/1
        inv_counts,                         # [B_pad, 1]      f32 1/|graph|
        x_p,                                # [N_pad, IN_pad] bf16
        bf(params["gin0_w1"]), params["gin0_b1"],
        bf(params["gin0_w2"]), params["gin0_b2"],
        params["ln0_g"], params["ln0_b"],
        bf(params["gin1_w1"]), params["gin1_b1"],
        bf(params["gin1_w2"]), params["gin1_b2"],
        params["ln1_g"], params["ln1_b"],
        bf(params["gin2_w1"]), params["gin2_b1"],
        bf(params["gin2_w2"]), params["gin2_b2"],
        bf(params["head_w1"]), params["head_b1"],
        bf(params["head_w2"]), params["head_b2"],
    )

    out_shape = (
        jax.ShapeDtypeStruct((n_pad, h_pad), jnp.float32),    # emb (padded)
        jax.ShapeDtypeStruct((b_pad, out_pad), jnp.float32),  # log-probs (padded)
    )

    # Advisory cost estimate for the XLA scheduler.
    flops = 2 * (
        n_pad * n_pad * (in_pad + 2 * h_pad)            # 3 aggregations
        + n_pad * (in_pad * h_pad + 5 * h_pad * h_pad)  # 6 GIN linears
        + b_pad * n_pad * h_pad                         # mean pool
        + b_pad * h_pad * (h_pad + out_pad)             # head MLP
    )
    transcendentals = 2 * n_pad + b_pad * (out_pad + 1)
    bytes_accessed = (
        sum(int(np.prod(a.shape)) * a.dtype.itemsize for a in inputs)
        + (n_pad * h_pad + b_pad * out_pad) * 4
    )

    kernel = functools.partial(_fused_gnn_kernel,
                               hidden_dim=hidden_dim, output_dim=output_dim)
    emb_p, logp_p = pl.pallas_call(
        kernel,
        out_shape=out_shape,
        in_specs=[pl.BlockSpec(memory_space=pltpu.MemorySpace.VMEM)]
        * len(inputs),
        out_specs=(pl.BlockSpec(memory_space=pltpu.MemorySpace.VMEM),
                   pl.BlockSpec(memory_space=pltpu.MemorySpace.VMEM)),
        cost_estimate=pl.CostEstimate(flops=int(flops),
                                      transcendentals=int(transcendentals),
                                      bytes_accessed=int(bytes_accessed)),
        compiler_params=pltpu.CompilerParams(
            vmem_limit_bytes=32 * 1024 * 1024),
    )(*inputs)

    # Only the sliced views are valid (padded rows/lanes carry garbage/bias).
    return emb_p[:n, :hidden_dim], logp_p[:num_graphs, :output_dim]


# ----------------------------------------------------------------------------
# Parameter init (PyTorch-Linear-style uniform, zero-padded to padded dims)
# ----------------------------------------------------------------------------
def _linear_params(key, fan_in, fan_out, fan_in_pad, fan_out_pad):
    kw, kb = jax.random.split(key)
    bound = 1.0 / np.sqrt(fan_in)
    w = jax.random.uniform(kw, (fan_in, fan_out), jnp.float32, -bound, bound)
    b = jax.random.uniform(kb, (1, fan_out), jnp.float32, -bound, bound)
    w = jnp.pad(w, ((0, fan_in_pad - fan_in), (0, fan_out_pad - fan_out)))
    b = jnp.pad(b, ((0, 0), (0, fan_out_pad - fan_out)))
    return w, b


def init_params(key, input_dim, hidden_dim, output_dim):
    # Input fan-in only needs the bf16 sublane multiple (16), not a full lane.
    in_pad = _round_up(input_dim, BF16_TILE)
    h_pad = _round_up(hidden_dim, LANE)
    out_pad = _round_up(output_dim, LANE)
    keys = jax.random.split(key, 8)
    p = {}
    # GIN layer 0: Linear(in,h) -> ReLU -> Linear(h,h)
    p["gin0_w1"], p["gin0_b1"] = _linear_params(keys[0], input_dim, hidden_dim, in_pad, h_pad)
    p["gin0_w2"], p["gin0_b2"] = _linear_params(keys[1], hidden_dim, hidden_dim, h_pad, h_pad)
    # GIN layers 1, 2: Linear(h,h) -> ReLU -> Linear(h,h)
    p["gin1_w1"], p["gin1_b1"] = _linear_params(keys[2], hidden_dim, hidden_dim, h_pad, h_pad)
    p["gin1_w2"], p["gin1_b2"] = _linear_params(keys[3], hidden_dim, hidden_dim, h_pad, h_pad)
    p["gin2_w1"], p["gin2_b1"] = _linear_params(keys[4], hidden_dim, hidden_dim, h_pad, h_pad)
    p["gin2_w2"], p["gin2_b2"] = _linear_params(keys[5], hidden_dim, hidden_dim, h_pad, h_pad)
    # LayerNorms (padded gamma/beta are zero so padded lanes stay zero)
    ln_g = jnp.pad(jnp.ones((1, hidden_dim), jnp.float32),
                   ((0, 0), (0, h_pad - hidden_dim)))
    ln_b = jnp.zeros((1, h_pad), jnp.float32)
    p["ln0_g"], p["ln0_b"] = ln_g, ln_b
    p["ln1_g"], p["ln1_b"] = ln_g, ln_b
    # post_mp: Linear(h,h) -> Dropout -> Linear(h,out)
    p["head_w1"], p["head_b1"] = _linear_params(keys[6], hidden_dim, hidden_dim, h_pad, h_pad)
    p["head_w2"], p["head_b2"] = _linear_params(keys[7], hidden_dim, output_dim, h_pad, out_pad)
    return p


# ----------------------------------------------------------------------------
# Graph construction: dense padded bf16 adjacency (A + I), exact 0/1 one-hot
# pool matrix, and f32 inverse graph sizes.  Padded nodes/graphs have all-zero
# adjacency/pool rows so they never contaminate real rows.
# ----------------------------------------------------------------------------
def build_dense_graph(edge_index, batch, num_nodes, num_graphs):
    n_pad = _round_up(max(num_nodes, 1), LANE)
    b_pad = _round_up(max(num_graphs, 1), BF16_TILE)
    src, dst = edge_index[0], edge_index[1]
    adj = jnp.zeros((n_pad, n_pad), jnp.float32).at[dst, src].add(1.0)
    diag = jnp.pad(jnp.eye(num_nodes, dtype=jnp.float32),
                   ((0, n_pad - num_nodes), (0, n_pad - num_nodes)))
    adj_hat = (adj + diag).astype(jnp.bfloat16)      # (1+eps)*x_i with eps=0
    one_hot = (batch[None, :] == jnp.arange(num_graphs)[:, None]).astype(jnp.float32)
    counts = jnp.maximum(one_hot.sum(axis=1, keepdims=True), 1.0)
    pool01 = jnp.pad(one_hot, ((0, b_pad - num_graphs),
                               (0, n_pad - num_nodes)))          # exact 0/1
    inv_counts = jnp.pad(1.0 / counts, ((0, b_pad - num_graphs), (0, 0)))
    return adj_hat, pool01, inv_counts.astype(jnp.float32)


# ----------------------------------------------------------------------------
# Pure-JAX f32 reference (mirrors the PyTorch forward in eval mode).
# ----------------------------------------------------------------------------
def reference_forward(params, x, edge_index, batch, num_nodes, num_graphs,
                      input_dim, hidden_dim, output_dim):
    adj = jnp.zeros((num_nodes, num_nodes), jnp.float32)
    adj = adj.at[edge_index[1], edge_index[0]].add(1.0)
    adj = adj + jnp.eye(num_nodes, dtype=jnp.float32)

    def lin(h, w, b, fi, fo):
        return h @ w[:fi, :fo] + b[:, :fo]

    def gin(h, pfx, fi):
        agg = adj @ h
        z = jnp.maximum(lin(agg, params[pfx + "_w1"], params[pfx + "_b1"],
                            fi, hidden_dim), 0.0)
        return lin(z, params[pfx + "_w2"], params[pfx + "_b2"],
                   hidden_dim, hidden_dim)

    def relu_ln(h, g, b):
        h = jnp.maximum(h, 0.0)
        mu = jnp.mean(h, axis=-1, keepdims=True)
        var = jnp.mean((h - mu) ** 2, axis=-1, keepdims=True)
        return ((h - mu) / jnp.sqrt(var + 1e-5)
                * params[g][:, :hidden_dim] + params[b][:, :hidden_dim])

    h = gin(x, "gin0", input_dim)
    h = relu_ln(h, "ln0_g", "ln0_b")
    h = gin(h, "gin1", hidden_dim)
    h = relu_ln(h, "ln1_g", "ln1_b")
    emb = gin(h, "gin2", hidden_dim)

    one_hot = (batch[None, :] == jnp.arange(num_graphs)[:, None]).astype(jnp.float32)
    pooled = (one_hot @ jnp.maximum(emb, 0.0)) / one_hot.sum(axis=1, keepdims=True)
    hh = lin(pooled, params["head_w1"], params["head_b1"], hidden_dim, hidden_dim)
    logits = lin(hh, params["head_w2"], params["head_b2"], hidden_dim, output_dim)
    logp = logits - jax.scipy.special.logsumexp(logits, axis=-1, keepdims=True)
    return emb, logp


if __name__ == "__main__":
    # 2 graphs, 8 nodes each (bidirectional ring), input=8, hidden=32, out=8.
    NUM_NODES = 16
    NUM_GRAPHS = 2
    INPUT_DIM = 8
    HIDDEN_DIM = 32
    OUTPUT_DIM = 8

    key = jax.random.PRNGKey(0)
    k_x, k_params = jax.random.split(key)

    x = jax.random.normal(k_x, (NUM_NODES, INPUT_DIM), jnp.float32)

    edges = []
    for g in range(NUM_GRAPHS):
        base = g * 8
        for i in range(8):
            a, b = base + i, base + (i + 1) % 8
            edges.append((a, b))
            edges.append((b, a))
    edge_index = jnp.array(np.array(edges, dtype=np.int32).T)  # [2, E]
    batch = jnp.array(np.repeat(np.arange(NUM_GRAPHS), 8).astype(np.int32))

    adj_hat, pool01, inv_counts = build_dense_graph(
        edge_index, batch, NUM_NODES, NUM_GRAPHS)
    params = init_params(k_params, INPUT_DIM, HIDDEN_DIM, OUTPUT_DIM)

    emb, logp = gnn_stack_graph_forward(
        params, x, adj_hat, pool01, inv_counts,
        hidden_dim=HIDDEN_DIM, output_dim=OUTPUT_DIM, num_graphs=NUM_GRAPHS)
    jax.block_until_ready((emb, logp))

    assert emb.shape == (NUM_NODES, HIDDEN_DIM)
    assert logp.shape == (NUM_GRAPHS, OUTPUT_DIM)
    # log_softmax rows must sum (in prob space) to 1
    assert np.allclose(np.exp(np.asarray(logp)).sum(axis=1), 1.0, atol=1e-4)

    # Explicit tolerance test vs. f32 reference (bf16 MXU inputs, f32 accum).
    emb_ref, logp_ref = reference_forward(
        params, x, edge_index, batch, NUM_NODES, NUM_GRAPHS,
        INPUT_DIM, HIDDEN_DIM, OUTPUT_DIM)
    emb_ref, logp_ref = np.asarray(emb_ref), np.asarray(logp_ref)

    def rel_maxerr(a, b):
        return float(np.max(np.abs(np.asarray(a) - b)) / (np.max(np.abs(b)) + 1e-6))

    assert rel_maxerr(emb, emb_ref) < 0.1, rel_maxerr(emb, emb_ref)
    assert rel_maxerr(logp, logp_ref) < 0.1, rel_maxerr(logp, logp_ref)

    print("KERNEL_OK")
</pallas_src>

<mosaic_0001>
module attributes {stable_mosaic.version = 11 : i64} {
  func.func @_fused_gnn_kernel(%arg0: memref<128x128xbf16, #tpu.memory_space<vmem>>, %arg1: memref<16x128xbf16, #tpu.memory_space<vmem>>, %arg2: memref<16x1xf32, #tpu.memory_space<vmem>>, %arg3: memref<128x16xbf16, #tpu.memory_space<vmem>>, %arg4: memref<16x128xbf16, #tpu.memory_space<vmem>>, %arg5: memref<1x128xf32, #tpu.memory_space<vmem>>, %arg6: memref<128x128xbf16, #tpu.memory_space<vmem>>, %arg7: memref<1x128xf32, #tpu.memory_space<vmem>>, %arg8: memref<1x128xf32, #tpu.memory_space<vmem>>, %arg9: memref<1x128xf32, #tpu.memory_space<vmem>>, %arg10: memref<128x128xbf16, #tpu.memory_space<vmem>>, %arg11: memref<1x128xf32, #tpu.memory_space<vmem>>, %arg12: memref<128x128xbf16, #tpu.memory_space<vmem>>, %arg13: memref<1x128xf32, #tpu.memory_space<vmem>>, %arg14: memref<1x128xf32, #tpu.memory_space<vmem>>, %arg15: memref<1x128xf32, #tpu.memory_space<vmem>>, %arg16: memref<128x128xbf16, #tpu.memory_space<vmem>>, %arg17: memref<1x128xf32, #tpu.memory_space<vmem>>, %arg18: memref<128x128xbf16, #tpu.memory_space<vmem>>, %arg19: memref<1x128xf32, #tpu.memory_space<vmem>>, %arg20: memref<128x128xbf16, #tpu.memory_space<vmem>>, %arg21: memref<1x128xf32, #tpu.memory_space<vmem>>, %arg22: memref<128x128xbf16, #tpu.memory_space<vmem>>, %arg23: memref<1x128xf32, #tpu.memory_space<vmem>>, %arg24: memref<128x128xf32, #tpu.memory_space<vmem>>, %arg25: memref<16x128xf32, #tpu.memory_space<vmem>>) attributes {dimension_semantics = [], scalar_prefetch = 0 : i64, scratch_operands = 0 : i64, tpu.core_type = #tpu.core_type<tc>} {
    %c0 = arith.constant 0 : index
    %c0_0 = arith.constant 0 : index
    %0 = vector.load %arg0[%c0, %c0_0] : memref<128x128xbf16, #tpu.memory_space<vmem>>, vector<128x128xbf16>
    %1 = tpu.iota {dimensions = array<i32: 1>} : vector<1x128xi32>
    %c32_i32 = arith.constant 32 : i32
    %2 = vector.broadcast %c32_i32 : i32 to vector<1x128xi32>
    %3 = arith.cmpi slt, %1, %2 : vector<1x128xi32>
    %4 = arith.extui %3 : vector<1x128xi1> to vector<1x128xi32>
    %5 = arith.sitofp %4 : vector<1x128xi32> to vector<1x128xf32>
    %c0_1 = arith.constant 0 : index
    %c0_2 = arith.constant 0 : index
    %6 = vector.load %arg3[%c0_1, %c0_2] : memref<128x16xbf16, #tpu.memory_space<vmem>>, vector<128x16xbf16>
    %cst = arith.constant dense<0.000000e+00> : vector<128x16xf32>
    %7 = tpu.matmul %0, %6, %cst {dimension_numbers = #tpu.dot_dimension_numbers<[1], [0], [0], [1], [0, 0, 1, 1], [], []>} : vector<128x128xbf16>, vector<128x16xbf16>, vector<128x16xf32> -> vector<128x16xf32>
    %8 = arith.truncf %7 : vector<128x16xf32> to vector<128x16xbf16>
    %c0_3 = arith.constant 0 : index
    %c0_4 = arith.constant 0 : index
    %9 = vector.load %arg4[%c0_3, %c0_4] : memref<16x128xbf16, #tpu.memory_space<vmem>>, vector<16x128xbf16>
    %cst_5 = arith.constant dense<0.000000e+00> : vector<128x128xf32>
    %10 = tpu.matmul %8, %9, %cst_5 {dimension_numbers = #tpu.dot_dimension_numbers<[1], [0], [0], [1], [0, 0, 1, 1], [], []>} : vector<128x16xbf16>, vector<16x128xbf16>, vector<128x128xf32> -> vector<128x128xf32>
    %c0_6 = arith.constant 0 : index
    %c0_7 = arith.constant 0 : index
    %11 = vector.load %arg5[%c0_6, %c0_7] : memref<1x128xf32, #tpu.memory_space<vmem>>, vector<1x128xf32>
    %12 = vector.broadcast %11 : vector<1x128xf32> to vector<128x128xf32>
    %13 = arith.addf %10, %12 : vector<128x128xf32>
    %cst_8 = arith.constant 0.000000e+00 : f32
    %14 = vector.broadcast %cst_8 : f32 to vector<128x128xf32>
    %15 = arith.maximumf %13, %14 : vector<128x128xf32>
    %16 = arith.truncf %15 : vector<128x128xf32> to vector<128x128xbf16>
    %c0_9 = arith.constant 0 : index
    %c0_10 = arith.constant 0 : index
    %17 = vector.load %arg6[%c0_9, %c0_10] : memref<128x128xbf16, #tpu.memory_space<vmem>>, vector<128x128xbf16>
    %cst_11 = arith.constant dense<0.000000e+00> : vector<128x128xf32>
    %18 = tpu.matmul %16, %17, %cst_11 {dimension_numbers = #tpu.dot_dimension_numbers<[1], [0], [0], [1], [0, 0, 1, 1], [], []>} : vector<128x128xbf16>, vector<128x128xbf16>, vector<128x128xf32> -> vector<128x128xf32>
    %c0_12 = arith.constant 0 : index
    %c0_13 = arith.constant 0 : index
    %19 = vector.load %arg7[%c0_12, %c0_13] : memref<1x128xf32, #tpu.memory_space<vmem>>, vector<1x128xf32>
    %20 = vector.broadcast %19 : vector<1x128xf32> to vector<128x128xf32>
    %21 = arith.addf %18, %20 : vector<128x128xf32>
    %cst_14 = arith.constant 0.000000e+00 : f32
    %22 = vector.broadcast %cst_14 : f32 to vector<128x128xf32>
    %23 = arith.maximumf %21, %22 : vector<128x128xf32>
    %24 = vector.broadcast %5 : vector<1x128xf32> to vector<128x128xf32>
    %25 = arith.mulf %23, %24 : vector<128x128xf32>
    %cst_15 = arith.constant dense<0.000000e+00> : vector<128xf32>
    %26 = vector.multi_reduction <add>, %25, %cst_15 [1] : vector<128x128xf32> to vector<128xf32>
    %27 = vector.shape_cast %26 : vector<128xf32> to vector<128x1xf32>
    %cst_16 = arith.constant 3.125000e-02 : f32
    %28 = vector.broadcast %cst_16 : f32 to vector<128x1xf32>
    %29 = arith.mulf %27, %28 : vector<128x1xf32>
    %30 = vector.broadcast %29 : vector<128x1xf32> to vector<128x128xf32>
    %31 = arith.subf %23, %30 : vector<128x128xf32>
    %32 = vector.broadcast %5 : vector<1x128xf32> to vector<128x128xf32>
    %33 = arith.mulf %31, %32 : vector<128x128xf32>
    %34 = arith.mulf %33, %33 : vector<128x128xf32>
    %cst_17 = arith.constant dense<0.000000e+00> : vector<128xf32>
    %35 = vector.multi_reduction <add>, %34, %cst_17 [1] : vector<128x128xf32> to vector<128xf32>
    %36 = vector.shape_cast %35 : vector<128xf32> to vector<128x1xf32>
    %cst_18 = arith.constant 3.125000e-02 : f32
    %37 = vector.broadcast %cst_18 : f32 to vector<128x1xf32>
    %38 = arith.mulf %36, %37 : vector<128x1xf32>
    %39 = vector.broadcast %29 : vector<128x1xf32> to vector<128x128xf32>
    %40 = arith.subf %23, %39 : vector<128x128xf32>
    %cst_19 = arith.constant 9.99999974E-6 : f32
    %41 = vector.broadcast %cst_19 : f32 to vector<128x1xf32>
    %42 = arith.addf %38, %41 : vector<128x1xf32>
    %43 = math.rsqrt %42 : vector<128x1xf32>
    %44 = vector.broadcast %43 : vector<128x1xf32> to vector<128x128xf32>
    %45 = arith.mulf %40, %44 : vector<128x128xf32>
    %c0_20 = arith.constant 0 : index
    %c0_21 = arith.constant 0 : index
    %46 = vector.load %arg8[%c0_20, %c0_21] : memref<1x128xf32, #tpu.memory_space<vmem>>, vector<1x128xf32>
    %47 = vector.broadcast %46 : vector<1x128xf32> to vector<128x128xf32>
    %48 = arith.mulf %45, %47 : vector<128x128xf32>
    %c0_22 = arith.constant 0 : index
    %c0_23 = arith.constant 0 : index
    %49 = vector.load %arg9[%c0_22, %c0_23] : memref<1x128xf32, #tpu.memory_space<vmem>>, vector<1x128xf32>
    %50 = vector.broadcast %49 : vector<1x128xf32> to vector<128x128xf32>
    %51 = arith.addf %48, %50 : vector<128x128xf32>
    %52 = arith.truncf %51 : vector<128x128xf32> to vector<128x128xbf16>
    %cst_24 = arith.constant dense<0.000000e+00> : vector<128x128xf32>
    %53 = tpu.matmul %0, %52, %cst_24 {dimension_numbers = #tpu.dot_dimension_numbers<[1], [0], [0], [1], [0, 0, 1, 1], [], []>} : vector<128x128xbf16>, vector<128x128xbf16>, vector<128x128xf32> -> vector<128x128xf32>
    %54 = arith.truncf %53 : vector<128x128xf32> to vector<128x128xbf16>
    %c0_25 = arith.constant 0 : index
    %c0_26 = arith.constant 0 : index
    %55 = vector.load %arg10[%c0_25, %c0_26] : memref<128x128xbf16, #tpu.memory_space<vmem>>, vector<128x128xbf16>
    %cst_27 = arith.constant dense<0.000000e+00> : vector<128x128xf32>
    %56 = tpu.matmul %54, %55, %cst_27 {dimension_numbers = #tpu.dot_dimension_numbers<[1], [0], [0], [1], [0, 0, 1, 1], [], []>} : vector<128x128xbf16>, vector<128x128xbf16>, vector<128x128xf32> -> vector<128x128xf32>
    %c0_28 = arith.constant 0 : index
    %c0_29 = arith.constant 0 : index
    %57 = vector.load %arg11[%c0_28, %c0_29] : memref<1x128xf32, #tpu.memory_space<vmem>>, vector<1x128xf32>
    %58 = vector.broadcast %57 : vector<1x128xf32> to vector<128x128xf32>
    %59 = arith.addf %56, %58 : vector<128x128xf32>
    %cst_30 = arith.constant 0.000000e+00 : f32
    %60 = vector.broadcast %cst_30 : f32 to vector<128x128xf32>
    %61 = arith.maximumf %59, %60 : vector<128x128xf32>
    %62 = arith.truncf %61 : vector<128x128xf32> to vector<128x128xbf16>
    %c0_31 = arith.constant 0 : index
    %c0_32 = arith.constant 0 : index
    %63 = vector.load %arg12[%c0_31, %c0_32] : memref<128x128xbf16, #tpu.memory_space<vmem>>, vector<128x128xbf16>
    %cst_33 = arith.constant dense<0.000000e+00> : vector<128x128xf32>
    %64 = tpu.matmul %62, %63, %cst_33 {dimension_numbers = #tpu.dot_dimension_numbers<[1], [0], [0], [1], [0, 0, 1, 1], [], []>} : vector<128x128xbf16>, vector<128x128xbf16>, vector<128x128xf32> -> vector<128x128xf32>
    %c0_34 = arith.constant 0 : index
    %c0_35 = arith.constant 0 : index
    %65 = vector.load %arg13[%c0_34, %c0_35] : memref<1x128xf32, #tpu.memory_space<vmem>>, vector<1x128xf32>
    %66 = vector.broadcast %65 : vector<1x128xf32> to vector<128x128xf32>
    %67 = arith.addf %64, %66 : vector<128x128xf32>
    %cst_36 = arith.constant 0.000000e+00 : f32
    %68 = vector.broadcast %cst_36 : f32 to vector<128x128xf32>
    %69 = arith.maximumf %67, %68 : vector<128x128xf32>
    %70 = vector.broadcast %5 : vector<1x128xf32> to vector<128x128xf32>
    %71 = arith.mulf %69, %70 : vector<128x128xf32>
    %cst_37 = arith.constant dense<0.000000e+00> : vector<128xf32>
    %72 = vector.multi_reduction <add>, %71, %cst_37 [1] : vector<128x128xf32> to vector<128xf32>
    %73 = vector.shape_cast %72 : vector<128xf32> to vector<128x1xf32>
    %cst_38 = arith.constant 3.125000e-02 : f32
    %74 = vector.broadcast %cst_38 : f32 to vector<128x1xf32>
    %75 = arith.mulf %73, %74 : vector<128x1xf32>
    %76 = vector.broadcast %75 : vector<128x1xf32> to vector<128x128xf32>
    %77 = arith.subf %69, %76 : vector<128x128xf32>
    %78 = vector.broadcast %5 : vector<1x128xf32> to vector<128x128xf32>
    %79 = arith.mulf %77, %78 : vector<128x128xf32>
    %80 = arith.mulf %79, %79 : vector<128x128xf32>
    %cst_39 = arith.constant dense<0.000000e+00> : vector<128xf32>
    %81 = vector.multi_reduction <add>, %80, %cst_39 [1] : vector<128x128xf32> to vector<128xf32>
    %82 = vector.shape_cast %81 : vector<128xf32> to vector<128x1xf32>
    %cst_40 = arith.constant 3.125000e-02 : f32
    %83 = vector.broadcast %cst_40 : f32 to vector<128x1xf32>
    %84 = arith.mulf %82, %83 : vector<128x1xf32>
    %85 = vector.broadcast %75 : vector<128x1xf32> to vector<128x128xf32>
    %86 = arith.subf %69, %85 : vector<128x128xf32>
    %cst_41 = arith.constant 9.99999974E-6 : f32
    %87 = vector.broadcast %cst_41 : f32 to vector<128x1xf32>
    %88 = arith.addf %84, %87 : vector<128x1xf32>
    %89 = math.rsqrt %88 : vector<128x1xf32>
    %90 = vector.broadcast %89 : vector<128x1xf32> to vector<128x128xf32>
    %91 = arith.mulf %86, %90 : vector<128x128xf32>
    %c0_42 = arith.constant 0 : index
    %c0_43 = arith.constant 0 : index
    %92 = vector.load %arg14[%c0_42, %c0_43] : memref<1x128xf32, #tpu.memory_space<vmem>>, vector<1x128xf32>
    %93 = vector.broadcast %92 : vector<1x128xf32> to vector<128x128xf32>
    %94 = arith.mulf %91, %93 : vector<128x128xf32>
    %c0_44 = arith.constant 0 : index
    %c0_45 = arith.constant 0 : index
    %95 = vector.load %arg15[%c0_44, %c0_45] : memref<1x128xf32, #tpu.memory_space<vmem>>, vector<1x128xf32>
    %96 = vector.broadcast %95 : vector<1x128xf32> to vector<128x128xf32>
    %97 = arith.addf %94, %96 : vector<128x128xf32>
    %98 = arith.truncf %97 : vector<128x128xf32> to vector<128x128xbf16>
    %cst_46 = arith.constant dense<0.000000e+00> : vector<128x128xf32>
    %99 = tpu.matmul %0, %98, %cst_46 {dimension_numbers = #tpu.dot_dimension_numbers<[1], [0], [0], [1], [0, 0, 1, 1], [], []>} : vector<128x128xbf16>, vector<128x128xbf16>, vector<128x128xf32> -> vector<128x128xf32>
    %100 = arith.truncf %99 : vector<128x128xf32> to vector<128x128xbf16>
    %c0_47 = arith.constant 0 : index
    %c0_48 = arith.constant 0 : index
    %101 = vector.load %arg16[%c0_47, %c0_48] : memref<128x128xbf16, #tpu.memory_space<vmem>>, vector<128x128xbf16>
    %cst_49 = arith.constant dense<0.000000e+00> : vector<128x128xf32>
    %102 = tpu.matmul %100, %101, %cst_49 {dimension_numbers = #tpu.dot_dimension_numbers<[1], [0], [0], [1], [0, 0, 1, 1], [], []>} : vector<128x128xbf16>, vector<128x128xbf16>, vector<128x128xf32> -> vector<128x128xf32>
    %c0_50 = arith.constant 0 : index
    %c0_51 = arith.constant 0 : index
    %103 = vector.load %arg17[%c0_50, %c0_51] : memref<1x128xf32, #tpu.memory_space<vmem>>, vector<1x128xf32>
    %104 = vector.broadcast %103 : vector<1x128xf32> to vector<128x128xf32>
    %105 = arith.addf %102, %104 : vector<128x128xf32>
    %cst_52 = arith.constant 0.000000e+00 : f32
    %106 = vector.broadcast %cst_52 : f32 to vector<128x128xf32>
    %107 = arith.maximumf %105, %106 : vector<128x128xf32>
    %108 = arith.truncf %107 : vector<128x128xf32> to vector<128x128xbf16>
    %c0_53 = arith.constant 0 : index
    %c0_54 = arith.constant 0 : index
    %109 = vector.load %arg18[%c0_53, %c0_54] : memref<128x128xbf16, #tpu.memory_space<vmem>>, vector<128x128xbf16>
    %cst_55 = arith.constant dense<0.000000e+00> : vector<128x128xf32>
    %110 = tpu.matmul %108, %109, %cst_55 {dimension_numbers = #tpu.dot_dimension_numbers<[1], [0], [0], [1], [0, 0, 1, 1], [], []>} : vector<128x128xbf16>, vector<128x128xbf16>, vector<128x128xf32> -> vector<128x128xf32>
    %c0_56 = arith.constant 0 : index
    %c0_57 = arith.constant 0 : index
    %111 = vector.load %arg19[%c0_56, %c0_57] : memref<1x128xf32, #tpu.memory_space<vmem>>, vector<1x128xf32>
    %112 = vector.broadcast %111 : vector<1x128xf32> to vector<128x128xf32>
    %113 = arith.addf %110, %112 : vector<128x128xf32>
    %c0_58 = arith.constant 0 : index
    %c0_59 = arith.constant 0 : index
    %114 = vector.load %arg24[%c0_58, %c0_59] : memref<128x128xf32, #tpu.memory_space<vmem>>, vector<128x128xf32>
    tpu.vector_store %arg24[%c0_58, %c0_59], %113 {strides = array<i32>} : memref<128x128xf32, #tpu.memory_space<vmem>>, vector<128x128xf32>,
    %c0_60 = arith.constant 0 : index
    %c0_61 = arith.constant 0 : index
    %115 = vector.load %arg1[%c0_60, %c0_61] : memref<16x128xbf16, #tpu.memory_space<vmem>>, vector<16x128xbf16>
    %cst_62 = arith.constant 0.000000e+00 : f32
    %116 = vector.broadcast %cst_62 : f32 to vector<128x128xf32>
    %117 = arith.maximumf %113, %116 : vector<128x128xf32>
    %118 = arith.truncf %117 : vector<128x128xf32> to vector<128x128xbf16>
    %cst_63 = arith.constant dense<0.000000e+00> : vector<16x128xf32>
    %119 = tpu.matmul %115, %118, %cst_63 {dimension_numbers = #tpu.dot_dimension_numbers<[1], [0], [0], [1], [0, 0, 1, 1], [], []>} : vector<16x128xbf16>, vector<128x128xbf16>, vector<16x128xf32> -> vector<16x128xf32>
    %c0_64 = arith.constant 0 : index
    %c0_65 = arith.constant 0 : index
    %120 = vector.load %arg2[%c0_64, %c0_65] : memref<16x1xf32, #tpu.memory_space<vmem>>, vector<16x1xf32>
    %121 = vector.broadcast %120 : vector<16x1xf32> to vector<16x128xf32>
    %122 = arith.mulf %119, %121 : vector<16x128xf32>
    %123 = arith.truncf %122 : vector<16x128xf32> to vector<16x128xbf16>
    %c0_66 = arith.constant 0 : index
    %c0_67 = arith.constant 0 : index
    %124 = vector.load %arg20[%c0_66, %c0_67] : memref<128x128xbf16, #tpu.memory_space<vmem>>, vector<128x128xbf16>
    %cst_68 = arith.constant dense<0.000000e+00> : vector<16x128xf32>
    %125 = tpu.matmul %123, %124, %cst_68 {dimension_numbers = #tpu.dot_dimension_numbers<[1], [0], [0], [1], [0, 0, 1, 1], [], []>} : vector<16x128xbf16>, vector<128x128xbf16>, vector<16x128xf32> -> vector<16x128xf32>
    %c0_69 = arith.constant 0 : index
    %c0_70 = arith.constant 0 : index
    %126 = vector.load %arg21[%c0_69, %c0_70] : memref<1x128xf32, #tpu.memory_space<vmem>>, vector<1x128xf32>
    %127 = vector.broadcast %126 : vector<1x128xf32> to vector<16x128xf32>
    %128 = arith.addf %125, %127 : vector<16x128xf32>
    %129 = arith.truncf %128 : vector<16x128xf32> to vector<16x128xbf16>
    %c0_71 = arith.constant 0 : index
    %c0_72 = arith.constant 0 : index
    %130 = vector.load %arg22[%c0_71, %c0_72] : memref<128x128xbf16, #tpu.memory_space<vmem>>, vector<128x128xbf16>
    %cst_73 = arith.constant dense<0.000000e+00> : vector<16x128xf32>
    %131 = tpu.matmul %129, %130, %cst_73 {dimension_numbers = #tpu.dot_dimension_numbers<[1], [0], [0], [1], [0, 0, 1, 1], [], []>} : vector<16x128xbf16>, vector<128x128xbf16>, vector<16x128xf32> -> vector<16x128xf32>
    %c0_74 = arith.constant 0 : index
    %c0_75 = arith.constant 0 : index
    %132 = vector.load %arg23[%c0_74, %c0_75] : memref<1x128xf32, #tpu.memory_space<vmem>>, vector<1x128xf32>
    %133 = vector.broadcast %132 : vector<1x128xf32> to vector<16x128xf32>
    %134 = arith.addf %131, %133 : vector<16x128xf32>
    %135 = tpu.iota {dimensions = array<i32: 1>} : vector<1x128xi32>
    %c8_i32 = arith.constant 8 : i32
    %136 = vector.broadcast %c8_i32 : i32 to vector<1x128xi32>
    %137 = arith.cmpi slt, %135, %136 : vector<1x128xi32>
    %cst_76 = arith.constant -1.000000e+30 : f32
    %138 = vector.shape_cast %137 : vector<1x128xi1> to vector<1x128xi1>
    %139 = vector.broadcast %138 : vector<1x128xi1> to vector<16x128xi1>
    %140 = vector.broadcast %cst_76 : f32 to vector<16x128xf32>
    %141 = arith.select %139, %134, %140 : vector<16x128xi1>, vector<16x128xf32>
    %cst_77 = arith.constant dense<0xFF800000> : vector<16xf32>
    %142 = vector.multi_reduction <maximumf>, %141, %cst_77 [1] : vector<16x128xf32> to vector<16xf32>
    %143 = vector.shape_cast %142 : vector<16xf32> to vector<16x1xf32>
    %144 = vector.broadcast %143 : vector<16x1xf32> to vector<16x128xf32>
    %145 = arith.subf %141, %144 : vector<16x128xf32>
    %146 = math.exp %145 : vector<16x128xf32>
    %cst_78 = arith.constant dense<0.000000e+00> : vector<16xf32>
    %147 = vector.multi_reduction <add>, %146, %cst_78 [1] : vector<16x128xf32> to vector<16xf32>
    %148 = vector.shape_cast %147 : vector<16xf32> to vector<16x1xf32>
    %149 = math.log %148 : vector<16x1xf32>
    %150 = arith.addf %149, %143 : vector<16x1xf32>
    %151 = vector.broadcast %150 : vector<16x1xf32> to vector<16x128xf32>
    %152 = arith.subf %141, %151 : vector<16x128xf32>
    %c0_79 = arith.constant 0 : index
    %c0_80 = arith.constant 0 : index
    %153 = vector.load %arg25[%c0_79, %c0_80] : memref<16x128xf32, #tpu.memory_space<vmem>>, vector<16x128xf32>
    tpu.vector_store %arg25[%c0_79, %c0_80], %152 {strides = array<i32>} : memref<16x128xf32, #tpu.memory_space<vmem>>, vector<16x128xf32>,
    return
  }
}

</mosaic_0001>

<bundles_post_ra>
// kernel: gnn_stack_graph_forward.1
= control target key start
LH: loop header
LB: loop body
LE: loop exit
PB: predicated region body
PF: predicated region fallthrough
CT: control target
= control target key end

     0   :  { %vm333_vm0 = vcmask 130048   ;;  %vm3259_vm2 = vmmov 0   ;;  %s4341_s3 = inlined_call_operand.vmem [shape: bf16[128,16], index: 3, kind: input, shape index: {}]   ;;  %s4342_s0 = inlined_call_operand.vmem [shape: bf16[128,128], index: 0, kind: input, shape index: {}]   ;;  %s4343_s4 = inlined_call_operand.vmem [shape: bf16[16,128], index: 4, kind: input, shape index: {}]   ;;  %s4344_s6 = inlined_call_operand.vmem [shape: bf16[128,128], index: 6, kind: input, shape index: {}]   ;;  %s4345_s5 = inlined_call_operand.vmem [shape: f32[1,128], index: 5, kind: input, shape index: {}]   ;;  %s4346_s7 = inlined_call_operand.vmem [shape: f32[1,128], index: 7, kind: input, shape index: {}]   ;;  %s4347_s10 = inlined_call_operand.vmem [shape: bf16[128,128], index: 10, kind: input, shape index: {}]   ;;  %s4348_s8 = inlined_call_operand.vmem [shape: f32[1,128], index: 8, kind: input, shape index: {}]   ;;  %s4349_s9 = inlined_call_operand.vmem [shape: f32[1,128], index: 9, kind: input, shape index: {}]   ;;  %s4350_s12 = inlined_call_operand.vmem [shape: bf16[128,128], index: 12, kind: input, shape index: {}]   ;;  %s4351_s11 = inlined_call_operand.vmem [shape: f32[1,128], index: 11, kind: input, shape index: {}]   ;;  %s4352_s13 = inlined_call_operand.vmem [shape: f32[1,128], index: 13, kind: input, shape index: {}]   ;;  %s4353_s16 = inlined_call_operand.vmem [shape: bf16[128,128], index: 16, kind: input, shape index: {}]   ;;  %s4354_s14 = inlined_call_operand.vmem [shape: f32[1,128], index: 14, kind: input, shape index: {}]   ;;  %s4355_s15 = inlined_call_operand.vmem [shape: f32[1,128], index: 15, kind: input, shape index: {}]   ;;  %s4356_s18 = inlined_call_operand.vmem [shape: bf16[128,128], index: 18, kind: input, shape index: {}]   ;;  %s4357_s17 = inlined_call_operand.vmem [shape: f32[1,128], index: 17, kind: input, shape index: {}]   ;;  %s4358_s1 = inlined_call_operand.vmem [shape: bf16[16,128], index: 1, kind: input, shape index: {}]   ;;  %s4359_s2 = inlined_call_operand.vmem [shape: f32[16,1], index: 2, kind: input, shape index: {}]   ;;  %s4360_s20 = inlined_call_operand.vmem [shape: bf16[128,128], index: 20, kind: input, shape index: {}]   ;;  %s4361_s19 = inlined_call_operand.vmem [shape: f32[1,128], index: 19, kind: input, shape index: {}]   ;;  %s4362_s24 = inlined_call_operand.vmem [shape: f32[128,128], index: 24, kind: output, shape index: {0}]   ;;  %s4363_s22 = inlined_call_operand.vmem [shape: bf16[128,128], index: 22, kind: input, shape index: {}]   ;;  %s4364_s21 = inlined_call_operand.vmem [shape: f32[1,128], index: 21, kind: input, shape index: {}]   ;;  %s4365_s23 = inlined_call_operand.vmem [shape: f32[1,128], index: 23, kind: input, shape index: {}]   ;;  %s4366_s25 = inlined_call_operand.vmem [shape: f32[16,128], index: 25, kind: output, shape index: {1}]  }
   0x1   :  { %4372 = sst [smem:[#allocation2_spill]] %s4341_s3 }
   0x2   :  { %4373 = sst [smem:[#allocation3_spill]] %s4342_s0 }
   0x3   :  { %4374 = sst [smem:[#allocation4_spill]] %s4343_s4  ;;  %s4383_s28 = sld [smem:[#allocation3_spill]] }
   0x4   :  { %4375 = sst [smem:[#allocation5_spill]] %s4344_s6 }
   0x5   :  { %4376 = sst [smem:[#allocation6_spill]] %s4345_s5 }
   0x6   :  { %4377 = sst [smem:[#allocation7_spill]] %s4346_s7  ;;  %s4386_s29 = sld [smem:[#allocation6_spill]] }
   0x7   :  { %4378 = sst [smem:[#allocation8_spill]] %s4347_s10  ;;  %s4382_s10 = sld [smem:[#allocation2_spill]] }
   0x8   :  { %4379 = sst [smem:[#allocation9_spill]] %s4348_s8  ;;  %s4387_s30 = sld [smem:[#allocation7_spill]] }
   0x9   :  { %4380 = sst [smem:[#allocation10_spill]] %s4349_s9  ;;  %v3105_v4 = vld [vmem:[%s4383_s28] sm:$0xff]   ;;  %v3106_v9 = vld [vmem:[%s4383_s28 + $0x8] sm:$0xff]   ;;  %v3107_v10 = vld [vmem:[%s4383_s28 + $0x10] sm:$0xff]   ;;  %s4384_s9 = sld [smem:[#allocation4_spill]] }
   0xa   :  { %4381 = sst [smem:[#allocation11_spill]] %s4350_s12  ;;  %2774 = vmatprep.mubr.bf16.mxu0 %v3105_v4  ;;  %v3108_v11 = vld [vmem:[%s4383_s28 + $0x18] sm:$0xff]   ;;  %v3109_v12 = vld [vmem:[%s4383_s28 + $0x20] sm:$0xff]   ;;  %v3110_v13 = vld [vmem:[%s4383_s28 + $0x28] sm:$0xff]   ;;  %s4385_s12 = sld [smem:[#allocation5_spill]] }
   0xb   :  { %v3111_v14 = vld [vmem:[%s4383_s28 + $0x30] sm:$0xff]   ;;  %v3112_v15 = vld [vmem:[%s4383_s28 + $0x38] sm:$0xff]   ;;  %s4388_s26 = sld [smem:[#allocation8_spill]]  ;;  %s4390_s7 = sld [smem:[#allocation10_spill]] }
   0xc   :  { %v2516_v49 = vld [vmem:[%s4386_s29] ss:$0 sm:$0xff] }
   0xd   :  { %v3097_v0 = vld [vmem:[%s4382_s10] sm:$0xff]   ;;  %v3098_v1 = vld [vmem:[%s4382_s10 + $0x8] sm:$0xff]   ;;  %v3099_v2 = vld [vmem:[%s4382_s10 + $0x10] sm:$0xff]  }
   0xe   :  { %2758 = vmatprep.subr.bf16.mxu0 %v3097_v0  ;;  %v3100_v3 = vld [vmem:[%s4382_s10 + $0x18] sm:$0xff]   ;;  %v3101_v5 = vld [vmem:[%s4382_s10 + $0x20] sm:$0xff]   ;;  %v3102_v6 = vld [vmem:[%s4382_s10 + $0x28] sm:$0xff]  }
   0xf   :  { %2759 = vmatpush3.bf16.msra.mxu0 %v3097_v0  ;;  %v3103_v7 = vld [vmem:[%s4382_s10 + $0x30] sm:$0xff]   ;;  %v3104_v8 = vld [vmem:[%s4382_s10 + $0x38] sm:$0xff]   ;;  %v3113_v16 = vld [vmem:[%s4384_s9] sm:$0xff]   ;;  %s4389_s9 = sld [smem:[#allocation9_spill]] }
  0x10   :  { %2760 = vmatprep.subr.bf16.mxu0 %v3098_v1  ;;  %2790 = vmatprep.subr.bf16.mxu1 %v3113_v16  ;;  %v3114_v17 = vld [vmem:[%s4385_s12] sm:$0xff]   ;;  %v3115_v24 = vld [vmem:[%s4385_s12 + $0x8] sm:$0xff]   ;;  %v3116_v27 = vld [vmem:[%s4385_s12 + $0x10] sm:$0xff]  }
  0x11   :  { %2791 = vmatpush3.bf16.msra.mxu1 %v3113_v16  ;;  %v3117_v32 = vld [vmem:[%s4385_s12 + $0x18] sm:$0xff]   ;;  %v3118_v35 = vld [vmem:[%s4385_s12 + $0x20] sm:$0xff]   ;;  %v3119_v40 = vld [vmem:[%s4385_s12 + $0x28] sm:$0xff]  }
  0x12   :  { %2808 = vmatprep.subr.bf16.mxu1 %v3114_v17  ;;  %v3120_v47 = vld [vmem:[%s4385_s12 + $0x30] sm:$0xff]   ;;  %v3121_v48 = vld [vmem:[%s4385_s12 + $0x38] sm:$0xff]  }
  0x13   :  { %2761 = vmatpush3.bf16.msra.mxu0 %v3098_v1 }
  0x14   :  { %2762 = vmatprep.subr.bf16.mxu0 %v3099_v2 }
  0x17   :  { %2763 = vmatpush3.bf16.msra.mxu0 %v3099_v2 }
  0x18   :  { %2764 = vmatprep.subr.bf16.mxu0 %v3100_v3 }
  0x1b   :  { %2765 = vmatpush3.bf16.msra.mxu0 %v3100_v3 }
  0x1c   :  { %2766 = vmatprep.subr.bf16.mxu0 %v3101_v5 }
  0x1f   :  { %2767 = vmatpush3.bf16.msra.mxu0 %v3101_v5 }
  0x20   :  { %2768 = vmatprep.subr.bf16.mxu0 %v3102_v6 }
  0x23   :  { %2769 = vmatpush3.bf16.msra.mxu0 %v3102_v6 }
  0x24   :  { %2770 = vmatprep.subr.bf16.mxu0 %v3103_v7 }
  0x27   :  { %2771 = vmatpush3.bf16.msra.mxu0 %v3103_v7 }
  0x28   :  { %2772 = vmatprep.subr.bf16.mxu0 %v3104_v8 }
  0x2b   :  { %2773 = vmatpush3.bf16.msra.mxu0 %v3104_v8 }
  0x2e   :  { %2775 = vmatmul.mubr.bf16.vlgmr.msra.gmra.mrb[0].mxu0 %v3106_v9 }
  0x2f   :  { %2778 = vmatprep.mubr.bf16.mxu0 %v3107_v10 }
  0x36   :  { %2779 = vmatmul.mubr.bf16.gmra.mrb[4].mxu0 %v3108_v11 }
  0x37   :  { %2782 = vmatprep.mubr.bf16.mxu0 %v3109_v12 }
  0x3e   :  { %2783 = vmatmul.mubr.bf16.gmra.mrb[8].mxu0 %v3110_v13 }
  0x3f   :  { %2786 = vmatprep.mubr.bf16.mxu0 %v3111_v14 }
  0x46   :  { %2787 = vmatmul.mubr.bf16.gmra.mrb[12].mxu0 %v3112_v15 }
  0x47   :  { %2856 = vmatprep.mubr.bf16.mxu0 %v3105_v4 }
 0x101   :  { %v2776_v18 = vpop.f32.mrb[0].mxu0 }
 0x102   :  { %v247_v19 = vpop.f32.mrb[1].mxu0 }
 0x103   :  { %v2777_v20 = vpop.f32.mrb[2].mxu0 }
 0x104   :  { %v311_v21 = vpack.c.bf16 %v2777_v20, %v2776_v18  ;;  %v250_v22 = vpop.f32.mrb[3].mxu0 }
 0x105   :  { %v310_v23 = vpack.c.bf16 %v250_v22, %v247_v19 }
 0x107   :  { %2792 = vmatprep.mubr.msk.bf16.mxu1 %vm333_vm0, %v310_v23 }
 0x108   :  { %2793 = vmatmul.mubr.msk.bf16.vlgmr.msra.gmra.mrb[0].mxu1 %vm333_vm0, %v311_v21 }
 0x109   :  { %v2780_v25 = vpop.f32.mrb[4].mxu0  ;;  %2809 = vmatpush3.bf16.msra.mxu1 %v3114_v17 }
 0x10a   :  { %v263_v26 = vpop.f32.mrb[5].mxu0  ;;  %2810 = vmatprep.subr.bf16.mxu1 %v3115_v24 }
 0x10b   :  { %v2781_v28 = vpop.f32.mrb[6].mxu0 }
 0x10c   :  { %v313_v29 = vpack.c.bf16 %v2781_v28, %v2780_v25  ;;  %v266_v30 = vpop.f32.mrb[7].mxu0 }
 0x10d   :  { %v312_v31 = vpack.c.bf16 %v266_v30, %v263_v26  ;;  %2811 = vmatpush3.bf16.msra.mxu1 %v3115_v24 }
 0x10e   :  { %2812 = vmatprep.subr.bf16.mxu1 %v3116_v27 }
 0x10f   :  { %2796 = vmatprep.mubr.msk.bf16.mxu1 %vm333_vm0, %v312_v31 }
 0x110   :  { %2797 = vmatmul.mubr.msk.bf16.gmra.mrb[4].mxu1 %vm333_vm0, %v313_v29 }
 0x111   :  { %v2784_v33 = vpop.f32.mrb[8].mxu0  ;;  %2813 = vmatpush3.bf16.msra.mxu1 %v3116_v27 }
 0x112   :  { %v279_v34 = vpop.f32.mrb[9].mxu0  ;;  %2814 = vmatprep.subr.bf16.mxu1 %v3117_v32 }
 0x113   :  { %v2785_v36 = vpop.f32.mrb[10].mxu0 }
 0x114   :  { %v315_v37 = vpack.c.bf16 %v2785_v36, %v2784_v33  ;;  %v282_v38 = vpop.f32.mrb[11].mxu0 }
 0x115   :  { %v314_v39 = vpack.c.bf16 %v282_v38, %v279_v34  ;;  %2815 = vmatpush3.bf16.msra.mxu1 %v3117_v32 }
 0x116   :  { %2816 = vmatprep.subr.bf16.mxu1 %v3118_v35 }
 0x117   :  { %2800 = vmatprep.mubr.msk.bf16.mxu1 %vm333_vm0, %v314_v39 }
 0x118   :  { %2801 = vmatmul.mubr.msk.bf16.gmra.mrb[8].mxu1 %vm333_vm0, %v315_v37 }
 0x119   :  { %v2788_v41 = vpop.f32.mrb[12].mxu0  ;;  %2817 = vmatpush3.bf16.msra.mxu1 %v3118_v35 }
 0x11a   :  { %v295_v42 = vpop.f32.mrb[13].mxu0  ;;  %2818 = vmatprep.subr.bf16.mxu1 %v3119_v40 }
 0x11b   :  { %v2789_v43 = vpop.f32.mrb[14].mxu0 }
 0x11c   :  { %v317_v44 = vpack.c.bf16 %v2789_v43, %v2788_v41  ;;  %v298_v45 = vpop.f32.mrb[15].mxu0 }
 0x11d   :  { %v316_v46 = vpack.c.bf16 %v298_v45, %v295_v42  ;;  %2819 = vmatpush3.bf16.msra.mxu1 %v3119_v40  ;;  %v96_v42 = vlaneseq }
 0x11e   :  { %2820 = vmatprep.subr.bf16.mxu1 %v3120_v47 }
 0x11f   :  { %2804 = vmatprep.mubr.msk.bf16.mxu1 %vm333_vm0, %v316_v46  ;;  %v3477_v43 = vand.u32 127, %v96_v42 }
 0x120   :  { %2805 = vmatmul.mubr.msk.bf16.gmra.mrb[12].mxu1 %vm333_vm0, %v317_v44  ;;  %v3482_v44 = vld [vmem:[%s4387_s30] ss:$0 sm:$0xff]  ;;  %s4391_s30 = sld [smem:[#allocation11_spill]] }
 0x121   :  { %2821 = vmatpush3.bf16.msra.mxu1 %v3120_v47  ;;  %vm98_vm1 = vcmp.lt.s32.totalorder %v3477_v43, 32  ;;  %vm2462_vm3 = vcmp.lt.s32.totalorder %v3477_v43, 8 }
 0x122   :  { %2822 = vmatprep.subr.bf16.mxu1 %v3121_v48 }
 0x125   :  { %2823 = vmatpush3.bf16.msra.mxu1 %v3121_v48 }
 0x1db   :  { %v2794_v50 = vpop.f32.mrb[0].mxu1 }
 0x1dc   :  { %v401_v51 = vadd.f32 %v2794_v50, %v2516_v49  ;;  %v392_v52 = vpop.f32.mrb[1].mxu1  ;;  %v3258_v50 = vmov 0.0  }
 0x1dd   :  { %v393_v53 = vadd.f32 %v2516_v49, %v392_v52  ;;  %v2795_v54 = vpop.f32.mrb[2].mxu1 }
 0x1de   :  { %v404_v55 = vadd.f32 %v2795_v54, %v2516_v49  ;;  %v395_v56 = vpop.f32.mrb[3].mxu1  ;;  %v457_v58 = vmax.f32 %v401_v51, 0.0  ;;  %v3492_v51 = vsel %vm98_vm1, 1.0, %v3258_v50 }
 0x1df   :  { %v396_v57 = vadd.f32 %v2516_v49, %v395_v56  ;;  %v455_v60 = vmax.f32 %v393_v53, 0.0 }
 0x1e0   :  { %v458_v59 = vmax.f32 %v404_v55, 0.0 }
 0x1e1   :  { %v456_v61 = vmax.f32 %v396_v57, 0.0 }
 0x1e2   :  { %v472_v62 = vpack.c.bf16 %v458_v59, %v457_v58 }
 0x1e3   :  { %v471_v63 = vpack.c.bf16 %v456_v61, %v455_v60  ;;  %v2798_v0 = vpop.f32.mrb[4].mxu1 }
 0x1e4   :  { %v417_v1 = vadd.f32 %v2798_v0, %v2516_v49  ;;  %v408_v2 = vpop.f32.mrb[5].mxu1 }
 0x1e5   :  { %v409_v3 = vadd.f32 %v2516_v49, %v408_v2  ;;  %v2799_v4 = vpop.f32.mrb[6].mxu1  ;;  %2824 = vmatprep.mubr.bf16.mxu1 %v471_v63 }
 0x1e6   :  { %v420_v5 = vadd.f32 %v2799_v4, %v2516_v49  ;;  %v411_v6 = vpop.f32.mrb[7].mxu1  ;;  %2825 = vmatmul.mubr.bf16.vlgmr.msra.gmra.mrb[16].mxu1 %v472_v62  ;;  %v461_v8 = vmax.f32 %v417_v1, 0.0 }
 0x1e7   :  { %v412_v7 = vadd.f32 %v2516_v49, %v411_v6  ;;  %v459_v10 = vmax.f32 %v409_v3, 0.0 }
 0x1e8   :  { %v462_v9 = vmax.f32 %v420_v5, 0.0 }
 0x1e9   :  { %v460_v11 = vmax.f32 %v412_v7, 0.0 }
 0x1ea   :  { %v474_v12 = vpack.c.bf16 %v462_v9, %v461_v8 }
 0x1eb   :  { %v473_v13 = vpack.c.bf16 %v460_v11, %v459_v10  ;;  %v2802_v14 = vpop.f32.mrb[8].mxu1 }
 0x1ec   :  { %v433_v15 = vadd.f32 %v2802_v14, %v2516_v49  ;;  %v424_v16 = vpop.f32.mrb[9].mxu1 }
 0x1ed   :  { %v425_v17 = vadd.f32 %v2516_v49, %v424_v16  ;;  %v2803_v18 = vpop.f32.mrb[10].mxu1  ;;  %2828 = vmatprep.mubr.bf16.mxu1 %v473_v13 }
 0x1ee   :  { %v436_v19 = vadd.f32 %v2803_v18, %v2516_v49  ;;  %v427_v20 = vpop.f32.mrb[11].mxu1  ;;  %2829 = vmatmul.mubr.bf16.gmra.mrb[20].mxu1 %v474_v12  ;;  %v465_v22 = vmax.f32 %v433_v15, 0.0 }
 0x1ef   :  { %v428_v21 = vadd.f32 %v2516_v49, %v427_v20  ;;  %v463_v24 = vmax.f32 %v425_v17, 0.0 }
 0x1f0   :  { %v466_v23 = vmax.f32 %v436_v19, 0.0 }
 0x1f1   :  { %v464_v25 = vmax.f32 %v428_v21, 0.0 }
 0x1f2   :  { %v476_v26 = vpack.c.bf16 %v466_v23, %v465_v22 }
 0x1f3   :  { %v475_v27 = vpack.c.bf16 %v464_v25, %v463_v24  ;;  %v2806_v28 = vpop.f32.mrb[12].mxu1 }
 0x1f4   :  { %v449_v29 = vadd.f32 %v2806_v28, %v2516_v49  ;;  %v440_v30 = vpop.f32.mrb[13].mxu1 }
 0x1f5   :  { %v441_v31 = vadd.f32 %v2516_v49, %v440_v30  ;;  %v2807_v32 = vpop.f32.mrb[14].mxu1  ;;  %2832 = vmatprep.mubr.bf16.mxu1 %v475_v27 }
 0x1f6   :  { %v452_v33 = vadd.f32 %v2807_v32, %v2516_v49  ;;  %v443_v34 = vpop.f32.mrb[15].mxu1  ;;  %2833 = vmatmul.mubr.bf16.gmra.mrb[24].mxu1 %v476_v26  ;;  %v469_v36 = vmax.f32 %v449_v29, 0.0 }
 0x1f7   :  { %v444_v35 = vadd.f32 %v2516_v49, %v443_v34  ;;  %v467_v38 = vmax.f32 %v441_v31, 0.0 }
 0x1f8   :  { %v470_v37 = vmax.f32 %v452_v33, 0.0 }
 0x1f9   :  { %v468_v39 = vmax.f32 %v444_v35, 0.0 }
 0x1fa   :  { %v478_v40 = vpack.c.bf16 %v470_v37, %v469_v36 }
 0x1fb   :  { %v477_v41 = vpack.c.bf16 %v468_v39, %v467_v38 }
 0x1fd   :  { %2836 = vmatprep.mubr.bf16.mxu1 %v477_v41 }
 0x1fe   :  { %2837 = vmatmul.mubr.bf16.gmra.mrb[28].mxu1 %v478_v40 }
 0x2b9   :  { %v2826_v45 = vpop.f32.mrb[16].mxu1 }
 0x2ba   :  { %v3486_v46 = vadd.f32 %v2826_v45, %v3482_v44  ;;  %v584_v47 = vpop.f32.mrb[17].mxu1 }
 0x2bb   :  { %v3489_v48 = vadd.f32 %v3482_v44, %v584_v47  ;;  %v2827_v49 = vpop.f32.mrb[18].mxu1 }
 0x2bc   :  { %v649_v52 = vmax.f32 %v3486_v46, 0.0  ;;  %v3496_v53 = vadd.f32 %v2827_v49, %v3482_v44  ;;  %v587_v54 = vpop.f32.mrb[19].mxu1 }
 0x2bd   :  { %v647_v55 = vmax.f32 %v3489_v48, 0.0  ;;  %v3500_v56 = vadd.f32 %v3482_v44, %v587_v54 }
 0x2be   :  { %v650_v57 = vmax.f32 %v3496_v53, 0.0  ;;  %v665_v58 = vmul.f32 %v3492_v51, %v649_v52 }
 0x2bf   :  { %v648_v59 = vmax.f32 %v3500_v56, 0.0  ;;  %v663_v60 = vmul.f32 %v3492_v51, %v647_v55 }
 0x2c0   :  { %683 = vadd.xlane.f32.xlu1 %v665_v58  ;;  %v666_v63 = vmul.f32 %v3492_v51, %v650_v57 }
 0x2c1   :  { %v2830_v61 = vpop.f32.mrb[20].mxu1  ;;  %679 = vadd.xlane.f32.xlu0 %v663_v60  ;;  %v664_v3 = vmul.f32 %v3492_v51, %v648_v59 }
 0x2c2   :  { %v600_v62 = vpop.f32.mrb[21].mxu1  ;;  %v3514_v0 = vadd.f32 %v2830_v61, %v3482_v44 }
 0x2c3   :  { %v3517_v1 = vadd.f32 %v3482_v44, %v600_v62  ;;  %v2831_v2 = vpop.f32.mrb[22].mxu1 }
 0x2c4   :  { %685 = vadd.xlane.f32.xlu1 %v666_v63  ;;  %v603_v4 = vpop.f32.mrb[23].mxu1  ;;  %v3524_v6 = vadd.f32 %v2831_v2, %v3482_v44  ;;  %v653_v8 = vmax.f32 %v3514_v0, 0.0 }
 0x2c5   :  { %v651_v5 = vmax.f32 %v3517_v1, 0.0  ;;  %v3527_v7 = vadd.f32 %v3482_v44, %v603_v4  ;;  %681 = vadd.xlane.f32.xlu0 %v664_v3 }
 0x2c6   :  { %v654_v11 = vmax.f32 %v3524_v6, 0.0  ;;  %v669_v18 = vmul.f32 %v3492_v51, %v653_v8 }
 0x2c7   :  { %v652_v9 = vmax.f32 %v3527_v7, 0.0  ;;  %v667_v10 = vmul.f32 %v3492_v51, %v651_v5 }
 0x2c8   :  { %v670_v23 = vmul.f32 %v3492_v51, %v654_v11 }
 0x2c9   :  { %v2834_v12 = vpop.f32.mrb[24].mxu1  ;;  %687 = vadd.xlane.f32.xlu0 %v667_v10  ;;  %v668_v13 = vmul.f32 %v3492_v51, %v652_v9 }
 0x2ca   :  { %v616_v14 = vpop.f32.mrb[25].mxu1  ;;  %v3539_v15 = vadd.f32 %v2834_v12, %v3482_v44 }
 0x2cb   :  { %v3542_v16 = vadd.f32 %v3482_v44, %v616_v14  ;;  %v2835_v17 = vpop.f32.mrb[26].mxu1  ;;  %689 = vadd.xlane.f32.xlu1 %v668_v13 }
 0x2cc   :  { %v619_v19 = vpop.f32.mrb[27].mxu1  ;;  %v3549_v21 = vadd.f32 %v2835_v17, %v3482_v44  ;;  %v657_v24 = vmax.f32 %v3539_v15, 0.0 }
 0x2cd   :  { %v655_v20 = vmax.f32 %v3542_v16, 0.0  ;;  %v3552_v22 = vadd.f32 %v3482_v44, %v619_v19  ;;  %691 = vadd.xlane.f32.xlu0 %v669_v18 }
 0x2ce   :  { %v658_v27 = vmax.f32 %v3549_v21, 0.0  ;;  %v673_v34 = vmul.f32 %v3492_v51, %v657_v24 }
 0x2cf   :  { %v656_v25 = vmax.f32 %v3552_v22, 0.0  ;;  %693 = vadd.xlane.f32.xlu1 %v670_v23  ;;  %v671_v26 = vmul.f32 %v3492_v51, %v655_v20 }
 0x2d0   :  { %v674_v39 = vmul.f32 %v3492_v51, %v658_v27 }
 0x2d1   :  { %695 = vadd.xlane.f32.xlu0 %v671_v26  ;;  %v2838_v28 = vpop.f32.mrb[28].mxu1  ;;  %v672_v29 = vmul.f32 %v3492_v51, %v656_v25 }
 0x2d2   :  { %v632_v30 = vpop.f32.mrb[29].mxu1  ;;  %v3567_v31 = vadd.f32 %v2838_v28, %v3482_v44 }
 0x2d3   :  { %v3570_v32 = vadd.f32 %v3482_v44, %v632_v30  ;;  %697 = vadd.xlane.f32.xlu1 %v672_v29  ;;  %v2839_v33 = vpop.f32.mrb[30].mxu1 }
 0x2d4   :  { %v635_v35 = vpop.f32.mrb[31].mxu1  ;;  %v3577_v37 = vadd.f32 %v2839_v33, %v3482_v44  ;;  %v661_v40 = vmax.f32 %v3567_v31, 0.0 }
 0x2d5   :  { %v659_v36 = vmax.f32 %v3570_v32, 0.0  ;;  %v3580_v38 = vadd.f32 %v3482_v44, %v635_v35  ;;  %699 = vadd.xlane.f32.xlu0 %v673_v34 }
 0x2d6   :  { %v662_v45 = vmax.f32 %v3577_v37, 0.0  ;;  %v677_v47 = vmul.f32 %v3492_v51, %v661_v40  ;;  %v3122_v37 = vld [vmem:[%s4388_s26] sm:$0xff]  }
 0x2d7   :  { %v660_v41 = vmax.f32 %v3580_v38, 0.0  ;;  %701 = vadd.xlane.f32.xlu1 %v674_v39  ;;  %v675_v42 = vmul.f32 %v3492_v51, %v659_v36  ;;  %2872 = vmatprep.subr.bf16.mxu1 %v3122_v37 }
 0x2d8   :  { %v678_v49 = vmul.f32 %v3492_v51, %v662_v45  ;;  %2873 = vmatpush3.bf16.msra.mxu1 %v3122_v37 }
 0x2d9   :  { %703 = vadd.xlane.f32.xlu0 %v675_v42  ;;  %v676_v44 = vmul.f32 %v3492_v51, %v660_v41 }
 0x2db   :  { %705 = vadd.xlane.f32.xlu1 %v676_v44 }
 0x2dd   :  { %707 = vadd.xlane.f32.xlu0 %v677_v47 }
 0x2df   :  { %709 = vadd.xlane.f32.xlu1 %v678_v49 }
 0x34d   :  { %v684_v54 = vpop.xlane.xlu1 %683 }
 0x34e   :  { %v713_v58 = vmul.f32 0.03125, %v684_v54  ;;  %v680_v60 = vpop.xlane.xlu0 %679 }
 0x34f   :  { %v711_v61 = vmul.f32 0.03125, %v680_v60 }
 0x350   :  { %v3602_v62 = vsub.f32 %v649_v52, %v713_v58 }
 0x351   :  { %v3606_v63 = vsub.f32 %v647_v55, %v711_v61  ;;  %v686_v2 = vpop.xlane.xlu1 %685 }
 0x352   :  { %v714_v3 = vmul.f32 0.03125, %v686_v2  ;;  %v682_v4 = vpop.xlane.xlu0 %681  ;;  %v745_v48 = vmul.f32 %v3492_v51, %v3602_v62 }
 0x353   :  { %v712_v10 = vmul.f32 0.03125, %v682_v4  ;;  %v743_v12 = vmul.f32 %v3492_v51, %v3606_v63 }
 0x354   :  { %v3612_v13 = vsub.f32 %v650_v57, %v714_v3  ;;  %v761_v19 = vmul.f32 %v745_v48, %v745_v48 }
 0x355   :  { %v3616_v46 = vsub.f32 %v648_v59, %v712_v10  ;;  %v759_v52 = vmul.f32 %v743_v12, %v743_v12 }
 0x356   :  { %v688_v55 = vpop.xlane.xlu0 %687  ;;  %v746_v53 = vmul.f32 %v3492_v51, %v3612_v13 }
 0x357   :  { %v715_v14 = vmul.f32 0.03125, %v688_v55  ;;  %775 = vadd.xlane.f32.xlu0 %v759_v52  ;;  %v744_v17 = vmul.f32 %v3492_v51, %v3616_v46 }
 0x358   :  { %v690_v18 = vpop.xlane.xlu1 %689  ;;  %v762_v33 = vmul.f32 %v746_v53, %v746_v53 }
 0x359   :  { %v3626_v57 = vsub.f32 %v651_v5, %v715_v14  ;;  %v716_v56 = vmul.f32 0.03125, %v690_v18  ;;  %v760_v59 = vmul.f32 %v744_v17, %v744_v17 }
 0x35a   :  { %v692_v23 = vpop.xlane.xlu0 %691 }
 0x35b   :  { %v3630_v26 = vsub.f32 %v652_v9, %v716_v56  ;;  %v717_v28 = vmul.f32 0.03125, %v692_v23  ;;  %777 = vadd.xlane.f32.xlu1 %v760_v59  ;;  %779 = vadd.xlane.f32.xlu0 %v761_v19  ;;  %v747_v29 = vmul.f32 %v3492_v51, %v3626_v57 }
 0x35c   :  { %v694_v30 = vpop.xlane.xlu1 %693 }
 0x35d   :  { %v3636_v1 = vsub.f32 %v653_v8, %v717_v28  ;;  %v718_v5 = vmul.f32 0.03125, %v694_v30  ;;  %v763_v34 = vmul.f32 %v747_v29, %v747_v29  ;;  %v748_v35 = vmul.f32 %v3492_v51, %v3630_v26  ;;  %v3124_v29 = vld [vmem:[%s4388_s26 + $0x10] sm:$0xff]   ;;  %v3125_v30 = vld [vmem:[%s4388_s26 + $0x18] sm:$0xff]  }
 0x35e   :  { %v696_v7 = vpop.xlane.xlu0 %695 }
 0x35f   :  { %v3642_v9 = vsub.f32 %v654_v11, %v718_v5  ;;  %v719_v39 = vmul.f32 0.03125, %v696_v7  ;;  %781 = vadd.xlane.f32.xlu1 %v762_v33  ;;  %783 = vadd.xlane.f32.xlu0 %v763_v34  ;;  %v749_v42 = vmul.f32 %v3492_v51, %v3636_v1  ;;  %v764_v0 = vmul.f32 %v748_v35, %v748_v35  ;;  %v3126_v33 = vld [vmem:[%s4388_s26 + $0x20] sm:$0xff]   ;;  %v3127_v5 = vld [vmem:[%s4388_s26 + $0x28] sm:$0xff]   ;;  %v3128_v34 = vld [vmem:[%s4388_s26 + $0x30] sm:$0xff]  }
 0x360   :  { %v698_v44 = vpop.xlane.xlu1 %697 }
 0x361   :  { %v3648_v8 = vsub.f32 %v655_v20, %v719_v39  ;;  %v720_v47 = vmul.f32 0.03125, %v698_v44  ;;  %v765_v49 = vmul.f32 %v749_v42, %v749_v42  ;;  %v750_v54 = vmul.f32 %v3492_v51, %v3642_v9 }
 0x362   :  { %v700_v6 = vpop.xlane.xlu0 %699 }
 0x363   :  { %v3654_v11 = vsub.f32 %v656_v25, %v720_v47  ;;  %v721_v58 = vmul.f32 0.03125, %v700_v6  ;;  %785 = vadd.xlane.f32.xlu1 %v764_v0  ;;  %787 = vadd.xlane.f32.xlu0 %v765_v49  ;;  %v751_v60 = vmul.f32 %v3492_v51, %v3648_v8  ;;  %v766_v16 = vmul.f32 %v750_v54, %v750_v54 }
 0x364   :  { %v702_v61 = vpop.xlane.xlu1 %701 }
 0x365   :  { %v3660_v20 = vsub.f32 %v657_v24, %v721_v58  ;;  %v722_v2 = vmul.f32 0.03125, %v702_v61  ;;  %v767_v3 = vmul.f32 %v751_v60, %v751_v60  ;;  %v752_v4 = vmul.f32 %v3492_v51, %v3654_v11 }
 0x366   :  { %v704_v22 = vpop.xlane.xlu0 %703 }
 0x367   :  { %v3666_v25 = vsub.f32 %v658_v27, %v722_v2  ;;  %v723_v10 = vmul.f32 0.03125, %v704_v22  ;;  %789 = vadd.xlane.f32.xlu1 %v766_v16  ;;  %791 = vadd.xlane.f32.xlu0 %v767_v3  ;;  %v753_v12 = vmul.f32 %v3492_v51, %v3660_v20  ;;  %v768_v15 = vmul.f32 %v752_v4, %v752_v4 }
 0x368   :  { %v706_v52 = vpop.xlane.xlu1 %705 }
 0x369   :  { %v3672_v24 = vsub.f32 %v659_v36, %v723_v10  ;;  %v724_v48 = vmul.f32 0.03125, %v706_v52  ;;  %v769_v55 = vmul.f32 %v753_v12, %v753_v12  ;;  %v754_v14 = vmul.f32 %v3492_v51, %v3666_v25 }
 0x36a   :  { %v708_v21 = vpop.xlane.xlu0 %707 }
 0x36b   :  { %v3678_v27 = vsub.f32 %v660_v41, %v724_v48  ;;  %v725_v17 = vmul.f32 0.03125, %v708_v21  ;;  %793 = vadd.xlane.f32.xlu1 %v768_v15  ;;  %795 = vadd.xlane.f32.xlu0 %v769_v55  ;;  %v755_v18 = vmul.f32 %v3492_v51, %v3672_v24  ;;  %v770_v32 = vmul.f32 %v754_v14, %v754_v14 }
 0x36c   :  { %v710_v53 = vpop.xlane.xlu1 %709 }
 0x36d   :  { %v3684_v36 = vsub.f32 %v661_v40, %v725_v17  ;;  %v726_v56 = vmul.f32 0.03125, %v710_v53  ;;  %v771_v59 = vmul.f32 %v755_v18, %v755_v18  ;;  %v756_v19 = vmul.f32 %v3492_v51, %v3678_v27  ;;  %v3721_v18 = vld [vmem:[%s4389_s9] ss:$0 sm:$0xff] }
 0x36f   :  { %v3690_v38 = vsub.f32 %v662_v45, %v726_v56  ;;  %797 = vadd.xlane.f32.xlu1 %v770_v32  ;;  %799 = vadd.xlane.f32.xlu0 %v771_v59  ;;  %v757_v41 = vmul.f32 %v3492_v51, %v3684_v36  ;;  %v772_v23 = vmul.f32 %v756_v19, %v756_v19  ;;  %v3123_v45 = vld [vmem:[%s4388_s26 + $0x8] sm:$0xff]  }
 0x370   :  { %2874 = vmatprep.subr.bf16.mxu1 %v3123_v45 }
 0x371   :  { %v773_v28 = vmul.f32 %v757_v41, %v757_v41  ;;  %v758_v31 = vmul.f32 %v3492_v51, %v3690_v38  ;;  %2875 = vmatpush3.bf16.msra.mxu1 %v3123_v45 }
 0x372   :  { %2876 = vmatprep.subr.bf16.mxu1 %v3124_v29 }
 0x373   :  { %801 = vadd.xlane.f32.xlu1 %v772_v23  ;;  %803 = vadd.xlane.f32.xlu0 %v773_v28  ;;  %v774_v40 = vmul.f32 %v758_v31, %v758_v31 }
 0x375   :  { %2877 = vmatpush3.bf16.msra.mxu1 %v3124_v29 }
 0x376   :  { %2878 = vmatprep.subr.bf16.mxu1 %v3125_v30 }
 0x377   :  { %805 = vadd.xlane.f32.xlu1 %v774_v40  ;;  %v3728_v40 = vld [vmem:[%s4390_s7] ss:$0 sm:$0xff] }
 0x379   :  { %2879 = vmatpush3.bf16.msra.mxu1 %v3125_v30 }
 0x37a   :  { %2880 = vmatprep.subr.bf16.mxu1 %v3126_v33 }
 0x37d   :  { %2881 = vmatpush3.bf16.msra.mxu1 %v3126_v33 }
 0x37e   :  { %2882 = vmatprep.subr.bf16.mxu1 %v3127_v5 }
 0x381   :  { %2883 = vmatpush3.bf16.msra.mxu1 %v3127_v5 }
 0x382   :  { %2884 = vmatprep.subr.bf16.mxu1 %v3128_v34 }
 0x385   :  { %2885 = vmatpush3.bf16.msra.mxu1 %v3128_v34 }
 0x3e4   :  { %v776_v35 = vpop.xlane.xlu0 %775 }
 0x3e5   :  { %v807_v7 = vmul.f32 0.03125, %v776_v35 }
 0x3e7   :  { %v823_v39 = vadd.f32 1e-05, %v807_v7 }
 0x3e8   :  { %v778_v42 = vpop.xlane.xlu1 %777  ;;  %v780_v44 = vpop.xlane.xlu0 %779 }
 0x3e9   :  { %3171 = vrsqrt.f32 %v823_v39  ;;  %v808_v0 = vmul.f32 0.03125, %v778_v42  ;;  %v809_v47 = vmul.f32 0.03125, %v780_v44 }
 0x3eb   :  { %v824_v49 = vadd.f32 1e-05, %v808_v0  ;;  %v825_v54 = vadd.f32 1e-05, %v809_v47 }
 0x3ec   :  { %v782_v6 = vpop.xlane.xlu1 %781  ;;  %v784_v58 = vpop.xlane.xlu0 %783 }
 0x3ed   :  { %3173 = vrsqrt.f32 %v824_v49  ;;  %v810_v60 = vmul.f32 0.03125, %v782_v6  ;;  %v811_v61 = vmul.f32 0.03125, %v784_v58 }
 0x3ee   :  { %3175 = vrsqrt.f32 %v825_v54 }
 0x3ef   :  { %v826_v16 = vadd.f32 1e-05, %v810_v60  ;;  %v827_v2 = vadd.f32 1e-05, %v811_v61 }
 0x3f0   :  { %v786_v3 = vpop.xlane.xlu1 %785  ;;  %v788_v4 = vpop.xlane.xlu0 %787 }
 0x3f1   :  { %3177 = vrsqrt.f32 %v826_v16  ;;  %v812_v22 = vmul.f32 0.03125, %v786_v3  ;;  %v813_v10 = vmul.f32 0.03125, %v788_v4 }
 0x3f2   :  { %3179 = vrsqrt.f32 %v827_v2 }
 0x3f3   :  { %v3172_v12 = vpop.eup %3171  ;;  %v828_v52 = vadd.f32 1e-05, %v812_v22  ;;  %v829_v15 = vadd.f32 1e-05, %v813_v10 }
 0x3f4   :  { %v790_v48 = vpop.xlane.xlu1 %789  ;;  %v792_v55 = vpop.xlane.xlu0 %791  ;;  %v855_v14 = vmul.f32 %v3172_v12, %v3606_v63 }
 0x3f5   :  { %3181 = vrsqrt.f32 %v828_v52  ;;  %v814_v21 = vmul.f32 0.03125, %v790_v48  ;;  %v815_v17 = vmul.f32 0.03125, %v792_v55 }
 0x3f6   :  { %3183 = vrsqrt.f32 %v829_v15  ;;  %v878_v28 = vmul.f32 %v3721_v18, %v855_v14 }
 0x3f7   :  { %v3174_v53 = vpop.eup %3173  ;;  %v830_v32 = vadd.f32 1e-05, %v814_v21  ;;  %v831_v56 = vadd.f32 1e-05, %v815_v17 }
 0x3f8   :  { %v3176_v59 = vpop.eup %3175  ;;  %v794_v19 = vpop.xlane.xlu1 %793  ;;  %v856_v23 = vmul.f32 %v3174_v53, %v3616_v46  ;;  %v901_v35 = vadd.f32 %v3728_v40, %v878_v28 }
 0x3f9   :  { %v796_v41 = vpop.xlane.xlu0 %795  ;;  %3185 = vrsqrt.f32 %v830_v32  ;;  %v816_v63 = vmul.f32 0.03125, %v794_v19  ;;  %v857_v37 = vmul.f32 %v3176_v59, %v3602_v62 }
 0x3fa   :  { %v817_v31 = vmul.f32 0.03125, %v796_v41  ;;  %3187 = vrsqrt.f32 %v831_v56  ;;  %v879_v45 = vmul.f32 %v3721_v18, %v856_v23 }
 0x3fb   :  { %v3178_v29 = vpop.eup %3177  ;;  %v832_v30 = vadd.f32 1e-05, %v816_v63  ;;  %v880_v42 = vmul.f32 %v3721_v18, %v857_v37 }
 0x3fc   :  { %v833_v33 = vadd.f32 1e-05, %v817_v31  ;;  %v3180_v5 = vpop.eup %3179  ;;  %v798_v46 = vpop.xlane.xlu1 %797  ;;  %v902_v7 = vadd.f32 %v3728_v40, %v879_v45  ;;  %v858_v39 = vmul.f32 %v3178_v29, %v3612_v13 }
 0x3fd   :  { %v800_v34 = vpop.xlane.xlu0 %799  ;;  %3189 = vrsqrt.f32 %v832_v30  ;;  %v818_v44 = vmul.f32 0.03125, %v798_v46  ;;  %v859_v49 = vmul.f32 %v3180_v5, %v3626_v57  ;;  %v903_v13 = vadd.f32 %v3728_v40, %v880_v42 }
 0x3fe   :  { %v819_v62 = vmul.f32 0.03125, %v800_v34  ;;  %3191 = vrsqrt.f32 %v833_v33  ;;  %v917_v0 = vpack.c.bf16 %v902_v7, %v901_v35  ;;  %v881_v47 = vmul.f32 %v3721_v18, %v858_v39 }
 0x3ff   :  { %v3182_v54 = vpop.eup %3181  ;;  %v834_v6 = vadd.f32 1e-05, %v818_v44  ;;  %v882_v4 = vmul.f32 %v3721_v18, %v859_v49 }
 0x400   :  { %v835_v58 = vadd.f32 1e-05, %v819_v62  ;;  %v3184_v60 = vpop.eup %3183  ;;  %v802_v61 = vpop.xlane.xlu1 %801  ;;  %2840 = vmatprep.subr.bf16.mxu0 %v917_v0  ;;  %v904_v2 = vadd.f32 %v3728_v40, %v881_v47  ;;  %v860_v3 = vmul.f32 %v3182_v54, %v3630_v26 }
 0x401   :  { %v804_v16 = vpop.xlane.xlu0 %803  ;;  %3193 = vrsqrt.f32 %v834_v6  ;;  %v820_v22 = vmul.f32 0.03125, %v802_v61  ;;  %2841 = vmatpush3.bf16.msra.mxu0 %v917_v0  ;;  %v861_v57 = vmul.f32 %v3184_v60, %v3636_v1  ;;  %v905_v26 = vadd.f32 %v3728_v40, %v882_v4  ;;  %v3247_v4 = vld [vmem:[%s4383_s28 + $0x28] sm:$0xff]  }
 0x402   :  { %v821_v10 = vmul.f32 0.03125, %v804_v16  ;;  %3195 = vrsqrt.f32 %v835_v58  ;;  %v918_v12 = vpack.c.bf16 %v904_v2, %v903_v13  ;;  %v883_v52 = vmul.f32 %v3721_v18, %v860_v3  ;;  %v3243_v3 = vld [vmem:[%s4383_s28 + $0x8] sm:$0xff]  }
 0x403   :  { %v3186_v15 = vpop.eup %3185  ;;  %v836_v48 = vadd.f32 1e-05, %v820_v22  ;;  %v884_v32 = vmul.f32 %v3721_v18, %v861_v57  ;;  %v3248_v22 = vld [vmem:[%s4383_s28 + $0x30] sm:$0xff]   ;;  %v3129_v57 = vld [vmem:[%s4388_s26 + $0x38] sm:$0xff]  }
 0x404   :  { %v837_v55 = vadd.f32 1e-05, %v821_v10  ;;  %v3188_v14 = vpop.eup %3187  ;;  %v806_v21 = vpop.xlane.xlu1 %805  ;;  %2842 = vmatprep.subr.bf16.mxu0 %v918_v12  ;;  %v906_v17 = vadd.f32 %v3728_v40, %v883_v52  ;;  %v862_v53 = vmul.f32 %v3186_v15, %v3642_v9  ;;  %v3249_v10 = vld [vmem:[%s4383_s28 + $0x38] sm:$0xff]   ;;  %2886 = vmatprep.subr.bf16.mxu1 %v3129_v57  ;;  %v3131_v52 = vld [vmem:[%s4391_s30 + $0x8] sm:$0xff]   ;;  %v3132_v15 = vld [vmem:[%s4391_s30 + $0x10] sm:$0xff]  }
 0x405   :  { %3197 = vrsqrt.f32 %v836_v48  ;;  %v822_v1 = vmul.f32 0.03125, %v806_v21  ;;  %2843 = vmatpush3.bf16.msra.mxu0 %v918_v12  ;;  %v863_v56 = vmul.f32 %v3188_v14, %v3648_v8  ;;  %v907_v63 = vadd.f32 %v3728_v40, %v884_v32  ;;  %2887 = vmatpush3.bf16.msra.mxu1 %v3129_v57  ;;  %v3130_v12 = vld [vmem:[%s4391_s30] sm:$0xff]   ;;  %v3133_v48 = vld [vmem:[%s4391_s30 + $0x18] sm:$0xff]   ;;  %v3135_v14 = vld [vmem:[%s4391_s30 + $0x28] sm:$0xff]  }
 0x406   :  { %3199 = vrsqrt.f32 %v837_v55  ;;  %v919_v59 = vpack.c.bf16 %v906_v17, %v905_v26  ;;  %v885_v19 = vmul.f32 %v3721_v18, %v862_v53  ;;  %v3134_v55 = vld [vmem:[%s4391_s30 + $0x20] sm:$0xff]  }
 0x407   :  { %v3190_v41 = vpop.eup %3189  ;;  %v838_v23 = vadd.f32 1e-05, %v822_v1  ;;  %v886_v37 = vmul.f32 %v3721_v18, %v863_v56 }
 0x408   :  { %v3192_v28 = vpop.eup %3191  ;;  %2844 = vmatprep.subr.bf16.mxu0 %v919_v59  ;;  %v908_v31 = vadd.f32 %v3728_v40, %v885_v19  ;;  %v864_v9 = vmul.f32 %v3190_v41, %v3654_v11 }
 0x409   :  { %3201 = vrsqrt.f32 %v838_v23  ;;  %2845 = vmatpush3.bf16.msra.mxu0 %v919_v59  ;;  %v865_v8 = vmul.f32 %v3192_v28, %v3660_v20  ;;  %v909_v5 = vadd.f32 %v3728_v40, %v886_v37 }
 0x40a   :  { %v920_v45 = vpack.c.bf16 %v908_v31, %v907_v63  ;;  %v887_v29 = vmul.f32 %v3721_v18, %v864_v9 }
 0x40b   :  { %v3194_v30 = vpop.eup %3193  ;;  %v888_v11 = vmul.f32 %v3721_v18, %v865_v8 }
 0x40c   :  { %v3196_v33 = vpop.eup %3195  ;;  %2846 = vmatprep.subr.bf16.mxu0 %v920_v45  ;;  %v910_v46 = vadd.f32 %v3728_v40, %v887_v29  ;;  %v866_v34 = vmul.f32 %v3194_v30, %v3666_v25 }
 0x40d   :  { %2847 = vmatpush3.bf16.msra.mxu0 %v920_v45  ;;  %v867_v35 = vmul.f32 %v3196_v33, %v3672_v24  ;;  %v911_v44 = vadd.f32 %v3728_v40, %v888_v11  ;;  %v3250_v11 = vld [vmem:[%s4383_s28] sm:$0xff]  }
 0x40e   :  { %v921_v7 = vpack.c.bf16 %v910_v46, %v909_v5  ;;  %v889_v20 = vmul.f32 %v3721_v18, %v866_v34 }
 0x40f   :  { %v3198_v39 = vpop.eup %3197  ;;  %v890_v47 = vmul.f32 %v3721_v18, %v867_v35  ;;  %v3136_v35 = vld [vmem:[%s4391_s30 + $0x30] sm:$0xff]  }
 0x410   :  { %v3200_v42 = vpop.eup %3199  ;;  %2848 = vmatprep.subr.bf16.mxu0 %v921_v7  ;;  %v912_v62 = vadd.f32 %v3728_v40, %v889_v20  ;;  %v868_v0 = vmul.f32 %v3198_v39, %v3678_v27  ;;  %v2537_v20 = vld [vmem:[%s4351_s11] ss:$0 sm:$0xff] }
 0x411   :  { %2849 = vmatpush3.bf16.msra.mxu0 %v921_v7  ;;  %v869_v25 = vmul.f32 %v3200_v42, %v3684_v36  ;;  %v913_v6 = vadd.f32 %v3728_v40, %v890_v47  ;;  %v3137_v7 = vld [vmem:[%s4391_s30 + $0x38] sm:$0xff]  }
 0x412   :  { %v922_v49 = vpack.c.bf16 %v912_v62, %v911_v44  ;;  %v891_v24 = vmul.f32 %v3721_v18, %v868_v0 }
 0x413   :  { %v3202_v54 = vpop.eup %3201  ;;  %v892_v61 = vmul.f32 %v3721_v18, %v869_v25 }
 0x414   :  { %2850 = vmatprep.subr.bf16.mxu0 %v922_v49  ;;  %v914_v58 = vadd.f32 %v3728_v40, %v891_v24  ;;  %v870_v60 = vmul.f32 %v3202_v54, %v3690_v38  ;;  %v3244_v38 = vld [vmem:[%s4383_s28 + $0x10] sm:$0xff]  }
 0x415   :  { %2851 = vmatpush3.bf16.msra.mxu0 %v922_v49  ;;  %v915_v36 = vadd.f32 %v3728_v40, %v892_v61 }
 0x416   :  { %v923_v27 = vpack.c.bf16 %v914_v58, %v913_v6  ;;  %v893_v16 = vmul.f32 %v3721_v18, %v870_v60  ;;  %v3245_v18 = vld [vmem:[%s4383_s28 + $0x18] sm:$0xff]  }
 0x418   :  { %2852 = vmatprep.subr.bf16.mxu0 %v923_v27  ;;  %v916_v13 = vadd.f32 %v3728_v40, %v893_v16  ;;  %v3246_v40 = vld [vmem:[%s4383_s28 + $0x20] sm:$0xff]  }
 0x419   :  { %2853 = vmatpush3.bf16.msra.mxu0 %v923_v27 }
 0x41a   :  { %v924_v2 = vpack.c.bf16 %v916_v13, %v915_v36 }
 0x41c   :  { %2854 = vmatprep.subr.bf16.mxu0 %v924_v2 }
 0x41d   :  { %2855 = vmatpush3.bf16.msra.mxu0 %v924_v2 }
 0x41e   :  { %2904 = vmatprep.subr.bf16.mxu0 %v3130_v12 }
 0x420   :  { %2857 = vmatmul.mubr.bf16.vlgmr.msra.gmra.mrb[16].mxu0 %v3243_v3 }
 0x421   :  { %2860 = vmatprep.mubr.bf16.mxu0 %v3244_v38  ;;  %2905 = vmatpush3.bf16.msra.mxu0 %v3130_v12 }
 0x422   :  { %2906 = vmatprep.subr.bf16.mxu0 %v3131_v52 }
 0x425   :  { %2907 = vmatpush3.bf16.msra.mxu0 %v3131_v52 }
 0x426   :  { %2908 = vmatprep.subr.bf16.mxu0 %v3132_v15 }
 0x428   :  { %2861 = vmatmul.mubr.bf16.gmra.mrb[20].mxu0 %v3245_v18 }
 0x429   :  { %2864 = vmatprep.mubr.bf16.mxu0 %v3246_v40  ;;  %2909 = vmatpush3.bf16.msra.mxu0 %v3132_v15 }
 0x42a   :  { %2910 = vmatprep.subr.bf16.mxu0 %v3133_v48 }
 0x42d   :  { %2911 = vmatpush3.bf16.msra.mxu0 %v3133_v48 }
 0x42e   :  { %2912 = vmatprep.subr.bf16.mxu0 %v3134_v55 }
 0x430   :  { %2865 = vmatmul.mubr.bf16.gmra.mrb[24].mxu0 %v3247_v4 }
 0x431   :  { %2868 = vmatprep.mubr.bf16.mxu0 %v3248_v22  ;;  %2913 = vmatpush3.bf16.msra.mxu0 %v3134_v55 }
 0x432   :  { %2914 = vmatprep.subr.bf16.mxu0 %v3135_v14 }
 0x435   :  { %2915 = vmatpush3.bf16.msra.mxu0 %v3135_v14 }
 0x436   :  { %2916 = vmatprep.subr.bf16.mxu0 %v3136_v35 }
 0x438   :  { %2869 = vmatmul.mubr.bf16.gmra.mrb[28].mxu0 %v3249_v10 }
 0x439   :  { %2917 = vmatpush3.bf16.msra.mxu0 %v3136_v35 }
 0x43a   :  { %2918 = vmatprep.subr.bf16.mxu0 %v3137_v7 }
 0x43d   :  { %2919 = vmatpush3.bf16.msra.mxu0 %v3137_v7 }
 0x4f3   :  { %v2858_v21 = vpop.f32.mrb[16].mxu0 }
 0x4f4   :  { %v959_v26 = vpop.f32.mrb[17].mxu0 }
 0x4f5   :  { %v2859_v17 = vpop.f32.mrb[18].mxu0 }
 0x4f6   :  { %v1023_v53 = vpack.c.bf16 %v2859_v17, %v2858_v21  ;;  %v962_v32 = vpop.f32.mrb[19].mxu0 }
 0x4f7   :  { %v1022_v1 = vpack.c.bf16 %v962_v32, %v959_v26 }
 0x4f9   :  { %2888 = vmatprep.mubr.bf16.mxu1 %v1022_v1 }
 0x4fa   :  { %2889 = vmatmul.mubr.bf16.vlgmr.msra.gmra.mrb[32].mxu1 %v1023_v53 }
 0x4fb   :  { %v2862_v56 = vpop.f32.mrb[20].mxu0 }
 0x4fc   :  { %v975_v59 = vpop.f32.mrb[21].mxu0 }
 0x4fd   :  { %v2863_v19 = vpop.f32.mrb[22].mxu0 }
 0x4fe   :  { %v1025_v41 = vpack.c.bf16 %v2863_v19, %v2862_v56  ;;  %v978_v23 = vpop.f32.mrb[23].mxu0 }
 0x4ff   :  { %v1024_v28 = vpack.c.bf16 %v978_v23, %v975_v59 }
 0x501   :  { %2892 = vmatprep.mubr.bf16.mxu1 %v1024_v28 }
 0x502   :  { %2893 = vmatmul.mubr.bf16.gmra.mrb[36].mxu1 %v1025_v41 }
 0x503   :  { %v2866_v63 = vpop.f32.mrb[24].mxu0 }
 0x504   :  { %v991_v31 = vpop.f32.mrb[25].mxu0 }
 0x505   :  { %v2867_v9 = vpop.f32.mrb[26].mxu0 }
 0x506   :  { %v1027_v37 = vpack.c.bf16 %v2867_v9, %v2866_v63  ;;  %v994_v8 = vpop.f32.mrb[27].mxu0 }
 0x507   :  { %v1026_v45 = vpack.c.bf16 %v994_v8, %v991_v31 }
 0x509   :  { %2896 = vmatprep.mubr.bf16.mxu1 %v1026_v45 }
 0x50a   :  { %2897 = vmatmul.mubr.bf16.gmra.mrb[40].mxu1 %v1027_v37 }
 0x50b   :  { %v2870_v29 = vpop.f32.mrb[28].mxu0 }
 0x50c   :  { %v1007_v30 = vpop.f32.mrb[29].mxu0 }
 0x50d   :  { %v2871_v33 = vpop.f32.mrb[30].mxu0 }
 0x50e   :  { %v1029_v5 = vpack.c.bf16 %v2871_v33, %v2870_v29  ;;  %v1010_v46 = vpop.f32.mrb[31].mxu0 }
 0x50f   :  { %v1028_v34 = vpack.c.bf16 %v1010_v46, %v1007_v30 }
 0x511   :  { %2900 = vmatprep.mubr.bf16.mxu1 %v1028_v34  ;;  %v3832_v34 = vld [vmem:[%s4352_s13] ss:$0 sm:$0xff] }
 0x512   :  { %2901 = vmatmul.mubr.bf16.gmra.mrb[44].mxu1 %v1029_v5 }
 0x513   :  { %2952 = vmatprep.mubr.bf16.mxu1 %v3250_v11 }
 0x5cd   :  { %v2890_v39 = vpop.f32.mrb[32].mxu1 }
 0x5ce   :  { %v1144_v42 = vadd.f32 %v2890_v39, %v2537_v20  ;;  %v1135_v44 = vpop.f32.mrb[33].mxu1 }
 0x5cf   :  { %v1136_v62 = vadd.f32 %v2537_v20, %v1135_v44  ;;  %v2891_v0 = vpop.f32.mrb[34].mxu1 }
 0x5d0   :  { %v1147_v47 = vadd.f32 %v2891_v0, %v2537_v20  ;;  %v1138_v25 = vpop.f32.mrb[35].mxu1  ;;  %v1200_v24 = vmax.f32 %v1144_v42, 0.0 }
 0x5d1   :  { %v1139_v49 = vadd.f32 %v2537_v20, %v1138_v25  ;;  %v1198_v6 = vmax.f32 %v1136_v62, 0.0 }
 0x5d2   :  { %v1201_v54 = vmax.f32 %v1147_v47, 0.0 }
 0x5d3   :  { %v1199_v58 = vmax.f32 %v1139_v49, 0.0 }
 0x5d4   :  { %v1215_v60 = vpack.c.bf16 %v1201_v54, %v1200_v24 }
 0x5d5   :  { %v1214_v61 = vpack.c.bf16 %v1199_v58, %v1198_v6  ;;  %v2894_v27 = vpop.f32.mrb[36].mxu1 }
 0x5d6   :  { %v1160_v16 = vadd.f32 %v2894_v27, %v2537_v20  ;;  %v1151_v36 = vpop.f32.mrb[37].mxu1 }
 0x5d7   :  { %v1152_v13 = vadd.f32 %v2537_v20, %v1151_v36  ;;  %v2895_v2 = vpop.f32.mrb[38].mxu1  ;;  %2920 = vmatprep.mubr.bf16.mxu0 %v1214_v61 }
 0x5d8   :  { %v1163_v3 = vadd.f32 %v2895_v2, %v2537_v20  ;;  %v1154_v38 = vpop.f32.mrb[39].mxu1  ;;  %2921 = vmatmul.mubr.bf16.vlgmr.msra.gmra.mrb[32].mxu0 %v1215_v60  ;;  %v1204_v40 = vmax.f32 %v1160_v16, 0.0 }
 0x5d9   :  { %v1155_v18 = vadd.f32 %v2537_v20, %v1154_v38  ;;  %v1202_v22 = vmax.f32 %v1152_v13, 0.0 }
 0x5da   :  { %v1205_v4 = vmax.f32 %v1163_v3, 0.0 }
 0x5db   :  { %v1203_v10 = vmax.f32 %v1155_v18, 0.0 }
 0x5dc   :  { %v1217_v57 = vpack.c.bf16 %v1205_v4, %v1204_v40 }
 0x5dd   :  { %v1216_v12 = vpack.c.bf16 %v1203_v10, %v1202_v22  ;;  %v2898_v52 = vpop.f32.mrb[40].mxu1 }
 0x5de   :  { %v1176_v15 = vadd.f32 %v2898_v52, %v2537_v20  ;;  %v1167_v48 = vpop.f32.mrb[41].mxu1 }
 0x5df   :  { %v1168_v55 = vadd.f32 %v2537_v20, %v1167_v48  ;;  %v2899_v14 = vpop.f32.mrb[42].mxu1  ;;  %2924 = vmatprep.mubr.bf16.mxu0 %v1216_v12 }
 0x5e0   :  { %v1179_v21 = vadd.f32 %v2899_v14, %v2537_v20  ;;  %v1170_v26 = vpop.f32.mrb[43].mxu1  ;;  %2925 = vmatmul.mubr.bf16.gmra.mrb[36].mxu0 %v1217_v57  ;;  %v1208_v53 = vmax.f32 %v1176_v15, 0.0 }
 0x5e1   :  { %v1171_v17 = vadd.f32 %v2537_v20, %v1170_v26  ;;  %v1206_v1 = vmax.f32 %v1168_v55, 0.0 }
 0x5e2   :  { %v1209_v32 = vmax.f32 %v1179_v21, 0.0 }
 0x5e3   :  { %v1207_v56 = vmax.f32 %v1171_v17, 0.0 }
 0x5e4   :  { %v1219_v59 = vpack.c.bf16 %v1209_v32, %v1208_v53 }
 0x5e5   :  { %v1218_v19 = vpack.c.bf16 %v1207_v56, %v1206_v1  ;;  %v2902_v41 = vpop.f32.mrb[44].mxu1 }
 0x5e6   :  { %v1192_v23 = vadd.f32 %v2902_v41, %v2537_v20  ;;  %v1183_v28 = vpop.f32.mrb[45].mxu1 }
 0x5e7   :  { %v1184_v63 = vadd.f32 %v2537_v20, %v1183_v28  ;;  %v2903_v31 = vpop.f32.mrb[46].mxu1  ;;  %2928 = vmatprep.mubr.bf16.mxu0 %v1218_v19 }
 0x5e8   :  { %v1195_v9 = vadd.f32 %v2903_v31, %v2537_v20  ;;  %v1186_v37 = vpop.f32.mrb[47].mxu1  ;;  %2929 = vmatmul.mubr.bf16.gmra.mrb[40].mxu0 %v1219_v59  ;;  %v1212_v45 = vmax.f32 %v1192_v23, 0.0 }
 0x5e9   :  { %v1187_v8 = vadd.f32 %v2537_v20, %v1186_v37  ;;  %v1210_v30 = vmax.f32 %v1184_v63, 0.0 }
 0x5ea   :  { %v1213_v29 = vmax.f32 %v1195_v9, 0.0 }
 0x5eb   :  { %v1211_v33 = vmax.f32 %v1187_v8, 0.0 }
 0x5ec   :  { %v1221_v5 = vpack.c.bf16 %v1213_v29, %v1212_v45 }
 0x5ed   :  { %v1220_v46 = vpack.c.bf16 %v1211_v33, %v1210_v30 }
 0x5ef   :  { %2932 = vmatprep.mubr.bf16.mxu0 %v1220_v46 }
 0x5f0   :  { %2933 = vmatmul.mubr.bf16.gmra.mrb[44].mxu0 %v1221_v5 }
 0x6ab   :  { %v2922_v11 = vpop.f32.mrb[32].mxu0 }
 0x6ac   :  { %v1327_v35 = vpop.f32.mrb[33].mxu0  ;;  %v3835_v7 = vadd.f32 %v2922_v11, %v3832_v34 }
 0x6ad   :  { %v3838_v20 = vadd.f32 %v3832_v34, %v1327_v35  ;;  %v2923_v39 = vpop.f32.mrb[34].mxu0 }
 0x6ae   :  { %v1330_v42 = vpop.f32.mrb[35].mxu0  ;;  %v3842_v62 = vadd.f32 %v2923_v39, %v3832_v34  ;;  %v1392_v47 = vmax.f32 %v3835_v7, 0.0 }
 0x6af   :  { %v1390_v44 = vmax.f32 %v3838_v20, 0.0  ;;  %v3845_v0 = vadd.f32 %v3832_v34, %v1330_v42 }
 0x6b0   :  { %v1393_v24 = vmax.f32 %v3842_v62, 0.0  ;;  %v1408_v16 = vmul.f32 %v3492_v51, %v1392_v47 }
 0x6b1   :  { %v1391_v25 = vmax.f32 %v3845_v0, 0.0  ;;  %v1406_v49 = vmul.f32 %v3492_v51, %v1390_v44 }
 0x6b2   :  { %v1409_v38 = vmul.f32 %v3492_v51, %v1393_v24 }
 0x6b3   :  { %v2926_v54 = vpop.f32.mrb[36].mxu0  ;;  %1422 = vadd.xlane.f32.xlu0 %v1406_v49  ;;  %v1407_v6 = vmul.f32 %v3492_v51, %v1391_v25 }
 0x6b4   :  { %v1343_v58 = vpop.f32.mrb[37].mxu0  ;;  %v3857_v60 = vadd.f32 %v2926_v54, %v3832_v34 }
 0x6b5   :  { %v3860_v61 = vadd.f32 %v3832_v34, %v1343_v58  ;;  %v2927_v27 = vpop.f32.mrb[38].mxu0  ;;  %1424 = vadd.xlane.f32.xlu1 %v1407_v6 }
 0x6b6   :  { %v1346_v36 = vpop.f32.mrb[39].mxu0  ;;  %v3867_v2 = vadd.f32 %v2927_v27, %v3832_v34  ;;  %v1396_v18 = vmax.f32 %v3857_v60, 0.0 }
 0x6b7   :  { %v1394_v13 = vmax.f32 %v3860_v61, 0.0  ;;  %v3870_v3 = vadd.f32 %v3832_v34, %v1346_v36  ;;  %1426 = vadd.xlane.f32.xlu0 %v1408_v16 }
 0x6b8   :  { %v1397_v22 = vmax.f32 %v3867_v2, 0.0  ;;  %v1412_v55 = vmul.f32 %v3492_v51, %v1396_v18 }
 0x6b9   :  { %v1395_v40 = vmax.f32 %v3870_v3, 0.0  ;;  %1428 = vadd.xlane.f32.xlu1 %v1409_v38  ;;  %v1410_v4 = vmul.f32 %v3492_v51, %v1394_v13 }
 0x6ba   :  { %v1413_v53 = vmul.f32 %v3492_v51, %v1397_v22 }
 0x6bb   :  { %v2930_v10 = vpop.f32.mrb[40].mxu0  ;;  %1430 = vadd.xlane.f32.xlu0 %v1410_v4  ;;  %v1411_v57 = vmul.f32 %v3492_v51, %v1395_v40 }
 0x6bc   :  { %v1359_v12 = vpop.f32.mrb[41].mxu0  ;;  %v3885_v52 = vadd.f32 %v2930_v10, %v3832_v34 }
 0x6bd   :  { %v3888_v15 = vadd.f32 %v3832_v34, %v1359_v12  ;;  %v2931_v48 = vpop.f32.mrb[42].mxu0  ;;  %1432 = vadd.xlane.f32.xlu1 %v1411_v57 }
 0x6be   :  { %v1362_v14 = vpop.f32.mrb[43].mxu0  ;;  %v3895_v26 = vadd.f32 %v2931_v48, %v3832_v34  ;;  %v1400_v32 = vmax.f32 %v3885_v52, 0.0 }
 0x6bf   :  { %v1398_v21 = vmax.f32 %v3888_v15, 0.0  ;;  %v3898_v17 = vadd.f32 %v3832_v34, %v1362_v14  ;;  %1434 = vadd.xlane.f32.xlu0 %v1412_v55 }
 0x6c0   :  { %v1401_v59 = vmax.f32 %v3895_v26, 0.0  ;;  %v1416_v9 = vmul.f32 %v3492_v51, %v1400_v32 }
 0x6c1   :  { %v1399_v1 = vmax.f32 %v3898_v17, 0.0  ;;  %1436 = vadd.xlane.f32.xlu1 %v1413_v53  ;;  %v1414_v56 = vmul.f32 %v3492_v51, %v1398_v21 }
 0x6c2   :  { %v1417_v30 = vmul.f32 %v3492_v51, %v1401_v59 }
 0x6c3   :  { %1438 = vadd.xlane.f32.xlu0 %v1414_v56  ;;  %v2934_v19 = vpop.f32.mrb[44].mxu0  ;;  %v1415_v41 = vmul.f32 %v3492_v51, %v1399_v1 }
 0x6c4   :  { %v1375_v23 = vpop.f32.mrb[45].mxu0  ;;  %v3913_v28 = vadd.f32 %v2934_v19, %v3832_v34 }
 0x6c5   :  { %v3916_v63 = vadd.f32 %v3832_v34, %v1375_v23  ;;  %1440 = vadd.xlane.f32.xlu1 %v1415_v41  ;;  %v2935_v31 = vpop.f32.mrb[46].mxu0 }
 0x6c6   :  { %v1378_v37 = vpop.f32.mrb[47].mxu0  ;;  %v3923_v45 = vadd.f32 %v2935_v31, %v3832_v34  ;;  %v1404_v33 = vmax.f32 %v3913_v28, 0.0 }
 0x6c7   :  { %v1402_v8 = vmax.f32 %v3916_v63, 0.0  ;;  %v3926_v29 = vadd.f32 %v3832_v34, %v1378_v37  ;;  %1442 = vadd.xlane.f32.xlu0 %v1416_v9 }
 0x6c8   :  { %v1405_v11 = vmax.f32 %v3923_v45, 0.0  ;;  %v1420_v35 = vmul.f32 %v3492_v51, %v1404_v33  ;;  %v3139_v45 = vld [vmem:[%s4353_s16 + $0x8] sm:$0xff]  }
 0x6c9   :  { %v1403_v5 = vmax.f32 %v3926_v29, 0.0  ;;  %1444 = vadd.xlane.f32.xlu1 %v1417_v30  ;;  %v1418_v46 = vmul.f32 %v3492_v51, %v1402_v8 }
 0x6ca   :  { %v1421_v39 = vmul.f32 %v3492_v51, %v1405_v11 }
 0x6cb   :  { %1446 = vadd.xlane.f32.xlu0 %v1418_v46  ;;  %v1419_v34 = vmul.f32 %v3492_v51, %v1403_v5 }
 0x6cd   :  { %1448 = vadd.xlane.f32.xlu1 %v1419_v34 }
 0x6cf   :  { %1450 = vadd.xlane.f32.xlu0 %v1420_v35 }
 0x6d1   :  { %1452 = vadd.xlane.f32.xlu1 %v1421_v39 }
 0x740   :  { %v1423_v42 = vpop.xlane.xlu0 %1422 }
 0x741   :  { %v1454_v49 = vmul.f32 0.03125, %v1423_v42 }
 0x742   :  { %v1425_v54 = vpop.xlane.xlu1 %1424 }
 0x743   :  { %v3948_v6 = vsub.f32 %v1390_v44, %v1454_v49  ;;  %v1455_v58 = vmul.f32 0.03125, %v1425_v54 }
 0x744   :  { %v1427_v27 = vpop.xlane.xlu0 %1426 }
 0x745   :  { %v3952_v16 = vsub.f32 %v1391_v25, %v1455_v58  ;;  %v1456_v36 = vmul.f32 0.03125, %v1427_v27  ;;  %v1486_v38 = vmul.f32 %v3492_v51, %v3948_v6 }
 0x746   :  { %v1429_v4 = vpop.xlane.xlu1 %1428 }
 0x747   :  { %v3958_v10 = vsub.f32 %v1392_v47, %v1456_v36  ;;  %v1457_v57 = vmul.f32 0.03125, %v1429_v4  ;;  %v1502_v12 = vmul.f32 %v1486_v38, %v1486_v38  ;;  %v1487_v20 = vmul.f32 %v3492_v51, %v3952_v16 }
 0x748   :  { %v1431_v44 = vpop.xlane.xlu0 %1430 }
 0x749   :  { %v3964_v0 = vsub.f32 %v1393_v24, %v1457_v57  ;;  %v1458_v25 = vmul.f32 0.03125, %v1431_v44  ;;  %1518 = vadd.xlane.f32.xlu0 %v1502_v12  ;;  %v1503_v48 = vmul.f32 %v1487_v20, %v1487_v20  ;;  %v1488_v55 = vmul.f32 %v3492_v51, %v3958_v10 }
 0x74a   :  { %v1433_v14 = vpop.xlane.xlu1 %1432 }
 0x74b   :  { %v3970_v7 = vsub.f32 %v1394_v13, %v1458_v25  ;;  %v1459_v47 = vmul.f32 0.03125, %v1433_v14  ;;  %1520 = vadd.xlane.f32.xlu1 %v1503_v48  ;;  %v1504_v53 = vmul.f32 %v1488_v55, %v1488_v55  ;;  %v1489_v56 = vmul.f32 %v3492_v51, %v3964_v0 }
 0x74c   :  { %v1435_v62 = vpop.xlane.xlu0 %1434 }
 0x74d   :  { %v3976_v24 = vsub.f32 %v1395_v40, %v1459_v47  ;;  %v1460_v19 = vmul.f32 0.03125, %v1435_v62  ;;  %1522 = vadd.xlane.f32.xlu0 %v1504_v53  ;;  %v1505_v41 = vmul.f32 %v1489_v56, %v1489_v56  ;;  %v1490_v23 = vmul.f32 %v3492_v51, %v3970_v7 }
 0x74e   :  { %v1437_v61 = vpop.xlane.xlu1 %1436 }
 0x74f   :  { %v3982_v13 = vsub.f32 %v1396_v18, %v1460_v19  ;;  %v1461_v31 = vmul.f32 0.03125, %v1437_v61  ;;  %1524 = vadd.xlane.f32.xlu1 %v1505_v41  ;;  %v1506_v9 = vmul.f32 %v1490_v23, %v1490_v23  ;;  %v1491_v37 = vmul.f32 %v3492_v51, %v3976_v24  ;;  %v3138_v41 = vld [vmem:[%s4353_s16] sm:$0xff]   ;;  %v3143_v61 = vld [vmem:[%s4353_s16 + $0x28] sm:$0xff]  }
 0x750   :  { %v1439_v3 = vpop.xlane.xlu0 %1438  ;;  %2968 = vmatprep.subr.bf16.mxu0 %v3138_v41  ;;  %v3142_v23 = vld [vmem:[%s4353_s16 + $0x20] sm:$0xff]  }
 0x751   :  { %v3988_v40 = vsub.f32 %v1397_v22, %v1461_v31  ;;  %v1462_v30 = vmul.f32 0.03125, %v1439_v3  ;;  %1526 = vadd.xlane.f32.xlu0 %v1506_v9  ;;  %v1507_v46 = vmul.f32 %v1491_v37, %v1491_v37  ;;  %v1492_v34 = vmul.f32 %v3492_v51, %v3982_v13  ;;  %2969 = vmatpush3.bf16.msra.mxu0 %v3138_v41  ;;  %v3144_v31 = vld [vmem:[%s4353_s16 + $0x30] sm:$0xff]  }
 0x752   :  { %v1441_v60 = vpop.xlane.xlu1 %1440  ;;  %2970 = vmatprep.subr.bf16.mxu0 %v3139_v45 }
 0x753   :  { %v3994_v18 = vsub.f32 %v1398_v21, %v1462_v30  ;;  %v1463_v35 = vmul.f32 0.03125, %v1441_v60  ;;  %1528 = vadd.xlane.f32.xlu1 %v1507_v46  ;;  %v1508_v39 = vmul.f32 %v1492_v34, %v1492_v34  ;;  %v1493_v42 = vmul.f32 %v3492_v51, %v3988_v40 }
 0x754   :  { %v1443_v2 = vpop.xlane.xlu0 %1442 }
 0x755   :  { %v4000_v22 = vsub.f32 %v1399_v1, %v1463_v35  ;;  %v1464_v49 = vmul.f32 0.03125, %v1443_v2  ;;  %1530 = vadd.xlane.f32.xlu0 %v1508_v39  ;;  %v1509_v54 = vmul.f32 %v1493_v42, %v1493_v42  ;;  %v1494_v58 = vmul.f32 %v3492_v51, %v3994_v18  ;;  %2971 = vmatpush3.bf16.msra.mxu0 %v3139_v45 }
 0x756   :  { %v1445_v15 = vpop.xlane.xlu1 %1444 }
 0x757   :  { %v4006_v21 = vsub.f32 %v1400_v32, %v1464_v49  ;;  %v1465_v27 = vmul.f32 0.03125, %v1445_v15  ;;  %1532 = vadd.xlane.f32.xlu1 %v1509_v54  ;;  %v1510_v36 = vmul.f32 %v1494_v58, %v1494_v58  ;;  %v1495_v38 = vmul.f32 %v3492_v51, %v4000_v22 }
 0x758   :  { %v1447_v17 = vpop.xlane.xlu0 %1446 }
 0x759   :  { %v4012_v1 = vsub.f32 %v1401_v59, %v1465_v27  ;;  %v1466_v4 = vmul.f32 0.03125, %v1447_v17  ;;  %1534 = vadd.xlane.f32.xlu0 %v1510_v36  ;;  %v1511_v57 = vmul.f32 %v1495_v38, %v1495_v38  ;;  %v1496_v12 = vmul.f32 %v3492_v51, %v4006_v21 }
 0x75a   :  { %v1449_v52 = vpop.xlane.xlu1 %1448 }
 0x75b   :  { %v4018_v32 = vsub.f32 %v1402_v8, %v1466_v4  ;;  %v1467_v20 = vmul.f32 0.03125, %v1449_v52  ;;  %1536 = vadd.xlane.f32.xlu1 %v1511_v57  ;;  %v1512_v44 = vmul.f32 %v1496_v12, %v1496_v12  ;;  %v1497_v25 = vmul.f32 %v3492_v51, %v4012_v1 }
 0x75c   :  { %v1451_v26 = vpop.xlane.xlu0 %1450 }
 0x75d   :  { %v4024_v59 = vsub.f32 %v1403_v5, %v1467_v20  ;;  %v1468_v48 = vmul.f32 0.03125, %v1451_v26  ;;  %1538 = vadd.xlane.f32.xlu0 %v1512_v44  ;;  %v1513_v55 = vmul.f32 %v1497_v25, %v1497_v25  ;;  %v1498_v14 = vmul.f32 %v3492_v51, %v4018_v32  ;;  %v4066_v44 = vld [vmem:[%s4354_s14] ss:$0 sm:$0xff] }
 0x75e   :  { %v1453_v63 = vpop.xlane.xlu1 %1452 }
 0x75f   :  { %v4030_v8 = vsub.f32 %v1404_v33, %v1468_v48  ;;  %v1469_v47 = vmul.f32 0.03125, %v1453_v63  ;;  %1540 = vadd.xlane.f32.xlu1 %v1513_v55  ;;  %v1514_v53 = vmul.f32 %v1498_v14, %v1498_v14  ;;  %v1499_v56 = vmul.f32 %v3492_v51, %v4024_v59 }
 0x761   :  { %v4036_v29 = vsub.f32 %v1405_v11, %v1469_v47  ;;  %1542 = vadd.xlane.f32.xlu0 %v1514_v53  ;;  %v1515_v5 = vmul.f32 %v1499_v56, %v1499_v56  ;;  %v1500_v62 = vmul.f32 %v3492_v51, %v4030_v8  ;;  %v3140_v11 = vld [vmem:[%s4353_s16 + $0x10] sm:$0xff]  }
 0x762   :  { %2972 = vmatprep.subr.bf16.mxu0 %v3140_v11 }
 0x763   :  { %1544 = vadd.xlane.f32.xlu1 %v1515_v5  ;;  %v1516_v19 = vmul.f32 %v1500_v62, %v1500_v62  ;;  %v1501_v28 = vmul.f32 %v3492_v51, %v4036_v29  ;;  %v3141_v51 = vld [vmem:[%s4353_s16 + $0x18] sm:$0xff]   ;;  %2973 = vmatpush3.bf16.msra.mxu0 %v3140_v11 }
 0x764   :  { %2974 = vmatprep.subr.bf16.mxu0 %v3141_v51 }
 0x765   :  { %1546 = vadd.xlane.f32.xlu0 %v1516_v19  ;;  %v1517_v33 = vmul.f32 %v1501_v28, %v1501_v28  ;;  %v4074_v19 = vld [vmem:[%s4355_s15] ss:$0 sm:$0xff] }
 0x767   :  { %1548 = vadd.xlane.f32.xlu1 %v1517_v33  ;;  %2975 = vmatpush3.bf16.msra.mxu0 %v3141_v51 }
 0x768   :  { %2976 = vmatprep.subr.bf16.mxu0 %v3142_v23 }
 0x76b   :  { %2977 = vmatpush3.bf16.msra.mxu0 %v3142_v23 }
 0x76c   :  { %2978 = vmatprep.subr.bf16.mxu0 %v3143_v61 }
 0x76f   :  { %2979 = vmatpush3.bf16.msra.mxu0 %v3143_v61 }
 0x770   :  { %2980 = vmatprep.subr.bf16.mxu0 %v3144_v31 }
 0x773   :  { %2981 = vmatpush3.bf16.msra.mxu0 %v3144_v31 }
 0x7d6   :  { %v1519_v9 = vpop.xlane.xlu0 %1518 }
 0x7d7   :  { %v1550_v37 = vmul.f32 0.03125, %v1519_v9 }
 0x7d8   :  { %v1521_v3 = vpop.xlane.xlu1 %1520 }
 0x7d9   :  { %v1566_v30 = vadd.f32 1e-05, %v1550_v37  ;;  %v1551_v46 = vmul.f32 0.03125, %v1521_v3 }
 0x7da   :  { %v1523_v34 = vpop.xlane.xlu0 %1522 }
 0x7db   :  { %3203 = vrsqrt.f32 %v1566_v30  ;;  %v1567_v60 = vadd.f32 1e-05, %v1551_v46  ;;  %v1552_v35 = vmul.f32 0.03125, %v1523_v34 }
 0x7dc   :  { %v1525_v39 = vpop.xlane.xlu1 %1524 }
 0x7dd   :  { %3205 = vrsqrt.f32 %v1567_v60  ;;  %v1568_v42 = vadd.f32 1e-05, %v1552_v35  ;;  %v1553_v2 = vmul.f32 0.03125, %v1525_v39 }
 0x7de   :  { %v1527_v49 = vpop.xlane.xlu0 %1526 }
 0x7df   :  { %3207 = vrsqrt.f32 %v1568_v42  ;;  %v1569_v54 = vadd.f32 1e-05, %v1553_v2  ;;  %v1554_v58 = vmul.f32 0.03125, %v1527_v49 }
 0x7e0   :  { %v1529_v15 = vpop.xlane.xlu1 %1528 }
 0x7e1   :  { %3209 = vrsqrt.f32 %v1569_v54  ;;  %v1570_v27 = vadd.f32 1e-05, %v1554_v58  ;;  %v1555_v36 = vmul.f32 0.03125, %v1529_v15 }
 0x7e2   :  { %v1531_v38 = vpop.xlane.xlu0 %1530 }
 0x7e3   :  { %3211 = vrsqrt.f32 %v1570_v27  ;;  %v1571_v17 = vadd.f32 1e-05, %v1555_v36  ;;  %v1556_v4 = vmul.f32 0.03125, %v1531_v38 }
 0x7e4   :  { %v1533_v57 = vpop.xlane.xlu1 %1532 }
 0x7e5   :  { %v3204_v12 = vpop.eup %3203  ;;  %3213 = vrsqrt.f32 %v1571_v17  ;;  %v1572_v52 = vadd.f32 1e-05, %v1556_v4  ;;  %v1557_v20 = vmul.f32 0.03125, %v1533_v57 }
 0x7e6   :  { %v1535_v25 = vpop.xlane.xlu0 %1534  ;;  %v1598_v26 = vmul.f32 %v3204_v12, %v3948_v6 }
 0x7e7   :  { %v3206_v48 = vpop.eup %3205  ;;  %3215 = vrsqrt.f32 %v1572_v52  ;;  %v1573_v55 = vadd.f32 1e-05, %v1557_v20  ;;  %v1558_v14 = vmul.f32 0.03125, %v1535_v25 }
 0x7e8   :  { %v1537_v63 = vpop.xlane.xlu1 %1536  ;;  %v1599_v47 = vmul.f32 %v3206_v48, %v3952_v16  ;;  %v1621_v53 = vmul.f32 %v4066_v44, %v1598_v26 }
 0x7e9   :  { %v3208_v56 = vpop.eup %3207  ;;  %3217 = vrsqrt.f32 %v1573_v55  ;;  %v1574_v5 = vadd.f32 1e-05, %v1558_v14  ;;  %v1559_v62 = vmul.f32 0.03125, %v1537_v63 }
 0x7ea   :  { %v1539_v28 = vpop.xlane.xlu0 %1538  ;;  %v1622_v6 = vmul.f32 %v4066_v44, %v1599_v47  ;;  %v1600_v33 = vmul.f32 %v3208_v56, %v3958_v10  ;;  %v1644_v51 = vadd.f32 %v4074_v19, %v1621_v53 }
 0x7eb   :  { %v3210_v41 = vpop.eup %3209  ;;  %3219 = vrsqrt.f32 %v1574_v5  ;;  %v1575_v45 = vadd.f32 1e-05, %v1559_v62  ;;  %v1560_v16 = vmul.f32 0.03125, %v1539_v28 }
 0x7ec   :  { %v1541_v11 = vpop.xlane.xlu1 %1540  ;;  %v1645_v23 = vadd.f32 %v4074_v19, %v1622_v6  ;;  %v1601_v61 = vmul.f32 %v3210_v41, %v3964_v0  ;;  %v1623_v31 = vmul.f32 %v4066_v44, %v1600_v33 }
 0x7ed   :  { %v3212_v9 = vpop.eup %3211  ;;  %3221 = vrsqrt.f32 %v1575_v45  ;;  %v1576_v37 = vadd.f32 1e-05, %v1560_v16  ;;  %v1561_v3 = vmul.f32 0.03125, %v1541_v11 }
 0x7ee   :  { %v1543_v30 = vpop.xlane.xlu0 %1542  ;;  %v1660_v46 = vpack.c.bf16 %v1645_v23, %v1644_v51  ;;  %v1624_v10 = vmul.f32 %v4066_v44, %v1601_v61  ;;  %v1602_v34 = vmul.f32 %v3212_v9, %v3970_v7  ;;  %v1646_v0 = vadd.f32 %v4074_v19, %v1623_v31 }
 0x7ef   :  { %v3214_v60 = vpop.eup %3213  ;;  %3223 = vrsqrt.f32 %v1576_v37  ;;  %v1577_v35 = vadd.f32 1e-05, %v1561_v3  ;;  %v1562_v39 = vmul.f32 0.03125, %v1543_v30 }
 0x7f0   :  { %v1545_v42 = vpop.xlane.xlu1 %1544  ;;  %2936 = vmatprep.subr.bf16.mxu1 %v1660_v46  ;;  %v1647_v2 = vadd.f32 %v4074_v19, %v1624_v10  ;;  %v1603_v49 = vmul.f32 %v3214_v60, %v3976_v24  ;;  %v1625_v54 = vmul.f32 %v4066_v44, %v1602_v34 }
 0x7f1   :  { %v3216_v58 = vpop.eup %3215  ;;  %3225 = vrsqrt.f32 %v1577_v35  ;;  %v1578_v15 = vadd.f32 1e-05, %v1562_v39  ;;  %v1563_v27 = vmul.f32 0.03125, %v1545_v42  ;;  %2937 = vmatpush3.bf16.msra.mxu1 %v1660_v46 }
 0x7f2   :  { %v1547_v7 = vpop.xlane.xlu0 %1546  ;;  %v1661_v36 = vpack.c.bf16 %v1647_v2, %v1646_v0  ;;  %v1626_v38 = vmul.f32 %v4066_v44, %v1603_v49  ;;  %v1604_v17 = vmul.f32 %v3216_v58, %v3982_v13  ;;  %v1648_v24 = vadd.f32 %v4074_v19, %v1625_v54  ;;  %v3251_v58 = vld [vmem:[%s4383_s28 + $0x8] sm:$0xff]  }
 0x7f3   :  { %v3218_v4 = vpop.eup %3217  ;;  %3227 = vrsqrt.f32 %v1578_v15  ;;  %v1579_v57 = vadd.f32 1e-05, %v1563_v27  ;;  %v1564_v12 = vmul.f32 0.03125, %v1547_v7  ;;  %v3255_v15 = vld [vmem:[%s4383_s28 + $0x28] sm:$0xff]   ;;  %v3256_v27 = vld [vmem:[%s4383_s28 + $0x30] sm:$0xff]   ;;  %v3257_v7 = vld [vmem:[%s4383_s28 + $0x38] sm:$0xff]  }
 0x7f4   :  { %v1549_v52 = vpop.xlane.xlu1 %1548  ;;  %2938 = vmatprep.subr.bf16.mxu1 %v1661_v36  ;;  %v1649_v20 = vadd.f32 %v4074_v19, %v1626_v38  ;;  %v1605_v25 = vmul.f32 %v3218_v4, %v3988_v40  ;;  %v1627_v26 = vmul.f32 %v4066_v44, %v1604_v17  ;;  %v3146_v38 = vld [vmem:[%s4356_s18] sm:$0xff]   ;;  %v3147_v17 = vld [vmem:[%s4356_s18 + $0x8] sm:$0xff]   ;;  %v3148_v4 = vld [vmem:[%s4356_s18 + $0x10] sm:$0xff]  }
 0x7f5   :  { %v3220_v48 = vpop.eup %3219  ;;  %3229 = vrsqrt.f32 %v1579_v57  ;;  %v1580_v55 = vadd.f32 1e-05, %v1564_v12  ;;  %v1565_v14 = vmul.f32 0.03125, %v1549_v52  ;;  %2939 = vmatpush3.bf16.msra.mxu1 %v1661_v36  ;;  %v3145_v36 = vld [vmem:[%s4353_s16 + $0x38] sm:$0xff]   ;;  %v3150_v12 = vld [vmem:[%s4356_s18 + $0x20] sm:$0xff]   ;;  %v3151_v52 = vld [vmem:[%s4356_s18 + $0x28] sm:$0xff]  }
 0x7f6   :  { %v1662_v13 = vpack.c.bf16 %v1649_v20, %v1648_v24  ;;  %v1628_v63 = vmul.f32 %v4066_v44, %v1605_v25  ;;  %v1606_v47 = vmul.f32 %v3220_v48, %v3994_v18  ;;  %v1650_v5 = vadd.f32 %v4074_v19, %v1627_v26  ;;  %2982 = vmatprep.subr.bf16.mxu0 %v3145_v36  ;;  %v3149_v57 = vld [vmem:[%s4356_s18 + $0x18] sm:$0xff]  }
 0x7f7   :  { %v3222_v53 = vpop.eup %3221  ;;  %3231 = vrsqrt.f32 %v1580_v55  ;;  %v1581_v56 = vadd.f32 1e-05, %v1565_v14  ;;  %2983 = vmatpush3.bf16.msra.mxu0 %v3145_v36 }
 0x7f8   :  { %2940 = vmatprep.subr.bf16.mxu1 %v1662_v13  ;;  %v1651_v40 = vadd.f32 %v4074_v19, %v1628_v63  ;;  %v1607_v62 = vmul.f32 %v3222_v53, %v4000_v22  ;;  %v1629_v28 = vmul.f32 %v4066_v44, %v1606_v47  ;;  %3032 = vmatprep.subr.bf16.mxu0 %v3258_v50 }
 0x7f9   :  { %v3224_v6 = vpop.eup %3223  ;;  %3233 = vrsqrt.f32 %v1581_v56  ;;  %2941 = vmatpush3.bf16.msra.mxu1 %v1662_v13 }
 0x7fa   :  { %v1663_v33 = vpack.c.bf16 %v1651_v40, %v1650_v5  ;;  %v1630_v41 = vmul.f32 %v4066_v44, %v1607_v62  ;;  %v1608_v18 = vmul.f32 %v3224_v6, %v4006_v21  ;;  %v1652_v16 = vadd.f32 %v4074_v19, %v1629_v28 }
 0x7fb   :  { %v3226_v45 = vpop.eup %3225 }
 0x7fc   :  { %2942 = vmatprep.subr.bf16.mxu1 %v1663_v33  ;;  %v1653_v11 = vadd.f32 %v4074_v19, %v1630_v41  ;;  %v1609_v51 = vmul.f32 %v3226_v45, %v4012_v1  ;;  %v1631_v22 = vmul.f32 %v4066_v44, %v1608_v18 }
 0x7fd   :  { %v3228_v23 = vpop.eup %3227  ;;  %2943 = vmatpush3.bf16.msra.mxu1 %v1663_v33 }
 0x7fe   :  { %v1664_v61 = vpack.c.bf16 %v1653_v11, %v1652_v16  ;;  %v1632_v31 = vmul.f32 %v4066_v44, %v1609_v51  ;;  %v1610_v9 = vmul.f32 %v3228_v23, %v4018_v32  ;;  %v1654_v21 = vadd.f32 %v4074_v19, %v1631_v22  ;;  %v3152_v22 = vld [vmem:[%s4356_s18 + $0x30] sm:$0xff]   ;;  %v3153_v23 = vld [vmem:[%s4356_s18 + $0x38] sm:$0xff]  }
 0x7ff   :  { %v3230_v37 = vpop.eup %3229 }
 0x800   :  { %2944 = vmatprep.subr.bf16.mxu1 %v1664_v61  ;;  %v1655_v3 = vadd.f32 %v4074_v19, %v1632_v31  ;;  %v1611_v30 = vmul.f32 %v3230_v37, %v4024_v59  ;;  %v1633_v46 = vmul.f32 %v4066_v44, %v1610_v9 }
 0x801   :  { %v3232_v1 = vpop.eup %3231  ;;  %2945 = vmatpush3.bf16.msra.mxu1 %v1664_v61  ;;  %v2557_v61 = vld [vmem:[%s4357_s17] ss:$0 sm:$0xff] }
 0x802   :  { %v1665_v10 = vpack.c.bf16 %v1655_v3, %v1654_v21  ;;  %v1634_v34 = vmul.f32 %v4066_v44, %v1611_v30  ;;  %v1612_v60 = vmul.f32 %v3232_v1, %v4030_v8  ;;  %v1656_v32 = vadd.f32 %v4074_v19, %v1633_v46 }
 0x803   :  { %v3234_v35 = vpop.eup %3233 }
 0x804   :  { %2946 = vmatprep.subr.bf16.mxu1 %v1665_v10  ;;  %v1657_v39 = vadd.f32 %v4074_v19, %v1634_v34  ;;  %v1613_v42 = vmul.f32 %v3234_v35, %v4036_v29  ;;  %v1635_v0 = vmul.f32 %v4066_v44, %v1612_v60  ;;  %v3252_v29 = vld [vmem:[%s4383_s28 + $0x10] sm:$0xff]  }
 0x805   :  { %2947 = vmatpush3.bf16.msra.mxu1 %v1665_v10 }
 0x806   :  { %v1666_v59 = vpack.c.bf16 %v1657_v39, %v1656_v32  ;;  %v1636_v2 = vmul.f32 %v4066_v44, %v1613_v42  ;;  %v1658_v49 = vadd.f32 %v4074_v19, %v1635_v0  ;;  %v3253_v44 = vld [vmem:[%s4383_s28 + $0x18] sm:$0xff]  }
 0x808   :  { %2948 = vmatprep.subr.bf16.mxu1 %v1666_v59  ;;  %v1659_v54 = vadd.f32 %v4074_v19, %v1636_v2  ;;  %v3254_v19 = vld [vmem:[%s4383_s28 + $0x20] sm:$0xff]  }
 0x809   :  { %2949 = vmatpush3.bf16.msra.mxu1 %v1666_v59 }
 0x80a   :  { %v1667_v8 = vpack.c.bf16 %v1659_v54, %v1658_v49 }
 0x80c   :  { %2950 = vmatprep.subr.bf16.mxu1 %v1667_v8 }
 0x80d   :  { %2951 = vmatpush3.bf16.msra.mxu1 %v1667_v8 }
 0x80e   :  { %3000 = vmatprep.subr.bf16.mxu1 %v3146_v38 }
 0x810   :  { %2953 = vmatmul.mubr.bf16.vlgmr.msra.gmra.mrb[48].mxu1 %v3251_v58 }
 0x811   :  { %2956 = vmatprep.mubr.bf16.mxu1 %v3252_v29  ;;  %3001 = vmatpush3.bf16.msra.mxu1 %v3146_v38 }
 0x812   :  { %3002 = vmatprep.subr.bf16.mxu1 %v3147_v17 }
 0x815   :  { %3003 = vmatpush3.bf16.msra.mxu1 %v3147_v17 }
 0x816   :  { %3004 = vmatprep.subr.bf16.mxu1 %v3148_v4 }
 0x818   :  { %2957 = vmatmul.mubr.bf16.gmra.mrb[52].mxu1 %v3253_v44 }
 0x819   :  { %2960 = vmatprep.mubr.bf16.mxu1 %v3254_v19  ;;  %3005 = vmatpush3.bf16.msra.mxu1 %v3148_v4 }
 0x81a   :  { %3006 = vmatprep.subr.bf16.mxu1 %v3149_v57 }
 0x81d   :  { %3007 = vmatpush3.bf16.msra.mxu1 %v3149_v57 }
 0x81e   :  { %3008 = vmatprep.subr.bf16.mxu1 %v3150_v12 }
 0x820   :  { %2961 = vmatmul.mubr.bf16.gmra.mrb[56].mxu1 %v3255_v15 }
 0x821   :  { %2964 = vmatprep.mubr.bf16.mxu1 %v3256_v27  ;;  %3009 = vmatpush3.bf16.msra.mxu1 %v3150_v12 }
 0x822   :  { %3010 = vmatprep.subr.bf16.mxu1 %v3151_v52 }
 0x825   :  { %3011 = vmatpush3.bf16.msra.mxu1 %v3151_v52 }
 0x826   :  { %3012 = vmatprep.subr.bf16.mxu1 %v3152_v22 }
 0x828   :  { %2965 = vmatmul.mubr.bf16.gmra.mrb[60].mxu1 %v3257_v7 }
 0x829   :  { %3013 = vmatpush3.bf16.msra.mxu1 %v3152_v22  ;;  %v3155_v22 = vld [vmem:[%s4360_s20] sm:$0xff]  }
 0x82a   :  { %3014 = vmatprep.subr.bf16.mxu1 %v3153_v23 }
 0x82d   :  { %3015 = vmatpush3.bf16.msra.mxu1 %v3153_v23  ;;  %v3156_v23 = vld [vmem:[%s4360_s20 + $0x8] sm:$0xff]  }
 0x82e   :  { %3052 = vmatprep.subr.bf16.mxu1 %v3258_v50 }
 0x8e3   :  { %v2954_v24 = vpop.f32.mrb[48].mxu1 }
 0x8e4   :  { %v1702_v20 = vpop.f32.mrb[49].mxu1 }
 0x8e5   :  { %v2955_v25 = vpop.f32.mrb[50].mxu1 }
 0x8e6   :  { %v1766_v26 = vpack.c.bf16 %v2955_v25, %v2954_v24  ;;  %v1705_v48 = vpop.f32.mrb[51].mxu1 }
 0x8e7   :  { %v1765_v55 = vpack.c.bf16 %v1705_v48, %v1702_v20 }
 0x8e9   :  { %2984 = vmatprep.mubr.bf16.mxu0 %v1765_v55 }
 0x8ea   :  { %2985 = vmatmul.mubr.bf16.vlgmr.msra.gmra.mrb[48].mxu0 %v1766_v26 }
 0x8eb   :  { %v2958_v14 = vpop.f32.mrb[52].mxu1 }
 0x8ec   :  { %v1718_v13 = vpop.f32.mrb[53].mxu1 }
 0x8ed   :  { %v2959_v63 = vpop.f32.mrb[54].mxu1 }
 0x8ee   :  { %v1768_v47 = vpack.c.bf16 %v2959_v63, %v2958_v14  ;;  %v1721_v53 = vpop.f32.mrb[55].mxu1 }
 0x8ef   :  { %v1767_v56 = vpack.c.bf16 %v1721_v53, %v1718_v13 }
 0x8f1   :  { %2988 = vmatprep.mubr.bf16.mxu0 %v1767_v56 }
 0x8f2   :  { %2989 = vmatmul.mubr.bf16.gmra.mrb[52].mxu0 %v1768_v47 }
 0x8f3   :  { %v2962_v5 = vpop.f32.mrb[56].mxu1 }
 0x8f4   :  { %v1734_v40 = vpop.f32.mrb[57].mxu1 }
 0x8f5   :  { %v2963_v62 = vpop.f32.mrb[58].mxu1 }
 0x8f6   :  { %v1770_v28 = vpack.c.bf16 %v2963_v62, %v2962_v5  ;;  %v1737_v6 = vpop.f32.mrb[59].mxu1 }
 0x8f7   :  { %v1769_v33 = vpack.c.bf16 %v1737_v6, %v1734_v40 }
 0x8f9   :  { %2992 = vmatprep.mubr.bf16.mxu0 %v1769_v33 }
 0x8fa   :  { %2993 = vmatmul.mubr.bf16.gmra.mrb[56].mxu0 %v1770_v28 }
 0x8fb   :  { %v2966_v41 = vpop.f32.mrb[60].mxu1 }
 0x8fc   :  { %v1750_v18 = vpop.f32.mrb[61].mxu1 }
 0x8fd   :  { %v2967_v45 = vpop.f32.mrb[62].mxu1 }
 0x8fe   :  { %v1772_v16 = vpack.c.bf16 %v2967_v45, %v2966_v41  ;;  %v1753_v11 = vpop.f32.mrb[63].mxu1 }
 0x8ff   :  { %v1771_v51 = vpack.c.bf16 %v1753_v11, %v1750_v18  ;;  %v2222_v11 = vld [vmem:[%s4359_s2] sm:$0xff] }
 0x901   :  { %2996 = vmatprep.mubr.bf16.mxu0 %v1771_v51  ;;  %v2223_v51 = vld [vmem:[%s4359_s2 + $0x8] sm:$0xff] }
 0x902   :  { %2997 = vmatmul.mubr.bf16.gmra.mrb[60].mxu0 %v1772_v16  ;;  %v3260_v16 = vmov 0  }
 0x903   :  { %3048 = vmatprep.mubr.msk.bf16.mxu0 %vm3259_vm2, %v3258_v50  ;;  %3095 = vset.pattern.permute.xlu0 %v3260_v16 }
 0x904   :  { %3096 = vset.pattern.permute.xlu1 %v3260_v16  ;;  %2226 = vperm.xlu0 %3095, %v2222_v11  }
 0x905   :  { %2231 = vperm.xlu1 %3096, %v2223_v51  }
 0x9bd   :  { %v2986_v31 = vpop.f32.mrb[48].mxu0 }
 0x9be   :  { %v1887_v9 = vadd.f32 %v2986_v31, %v2557_v61  ;;  %v1878_v37 = vpop.f32.mrb[49].mxu0  ;;  %v3158_v31 = vld [vmem:[%s4360_s20 + $0x18] sm:$0xff]  }
 0x9bf   :  { %v1879_v21 = vadd.f32 %v2557_v61, %v1878_v37  ;;  %v2987_v3 = vpop.f32.mrb[50].mxu0  ;;  %v3160_v37 = vld [vmem:[%s4360_s20 + $0x28] sm:$0xff]  }
 0x9c0   :  { %v1890_v30 = vadd.f32 %v2987_v3, %v2557_v61  ;;  %v1881_v46 = vpop.f32.mrb[51].mxu0  ;;  %v1943_v10 = vmax.f32 %v1887_v9, 0.0  ;;  %v3159_v9 = vld [vmem:[%s4360_s20 + $0x20] sm:$0xff]  }
 0x9c1   :  { %v1882_v1 = vadd.f32 %v2557_v61, %v1881_v46  ;;  %v1941_v60 = vmax.f32 %v1879_v21, 0.0  ;;  %v4211_v21 = vld [vmem:[%s4361_s19] ss:$0 sm:$0xff] }
 0x9c2   :  { %v1944_v34 = vmax.f32 %v1890_v30, 0.0 }
 0x9c3   :  { %v1942_v35 = vmax.f32 %v1882_v1, 0.0 }
 0x9c4   :  { %v1958_v32 = vpack.c.bf16 %v1944_v34, %v1943_v10 }
 0x9c5   :  { %v1957_v39 = vpack.c.bf16 %v1942_v35, %v1941_v60  ;;  %v2990_v42 = vpop.f32.mrb[52].mxu0 }
 0x9c6   :  { %v1903_v0 = vadd.f32 %v2990_v42, %v2557_v61  ;;  %v1894_v59 = vpop.f32.mrb[53].mxu0 }
 0x9c7   :  { %v1895_v2 = vadd.f32 %v2557_v61, %v1894_v59  ;;  %v2991_v49 = vpop.f32.mrb[54].mxu0  ;;  %3016 = vmatprep.mubr.bf16.mxu1 %v1957_v39 }
 0x9c8   :  { %v1906_v54 = vadd.f32 %v2991_v49, %v2557_v61  ;;  %v1897_v8 = vpop.f32.mrb[55].mxu0  ;;  %3017 = vmatmul.mubr.bf16.vlgmr.msra.gmra.mrb[64].mxu1 %v1958_v32  ;;  %v1947_v29 = vmax.f32 %v1903_v0, 0.0 }
 0x9c9   :  { %v1898_v58 = vadd.f32 %v2557_v61, %v1897_v8  ;;  %v1945_v19 = vmax.f32 %v1895_v2, 0.0  ;;  %3053 = vmatpush3.bf16.msra.mxu1 %v3155_v22 }
 0x9ca   :  { %v1948_v44 = vmax.f32 %v1906_v54, 0.0  ;;  %3054 = vmatprep.subr.bf16.mxu1 %v3258_v50 }
 0x9cb   :  { %v1946_v15 = vmax.f32 %v1898_v58, 0.0 }
 0x9cc   :  { %v1960_v27 = vpack.c.bf16 %v1948_v44, %v1947_v29 }
 0x9cd   :  { %v1959_v7 = vpack.c.bf16 %v1946_v15, %v1945_v19  ;;  %v2994_v36 = vpop.f32.mrb[56].mxu0  ;;  %3055 = vmatpush3.bf16.msra.mxu1 %v3156_v23  ;;  %v3154_v23 = vld [vmem:[%s4358_s1] sm:$0xff]  }
 0x9ce   :  { %v1919_v38 = vadd.f32 %v2994_v36, %v2557_v61  ;;  %v1910_v17 = vpop.f32.mrb[57].mxu0  ;;  %3056 = vmatprep.subr.bf16.mxu1 %v3258_v50 }
 0x9cf   :  { %v1911_v4 = vadd.f32 %v2557_v61, %v1910_v17  ;;  %v2995_v57 = vpop.f32.mrb[58].mxu0  ;;  %3020 = vmatprep.mubr.bf16.mxu1 %v1959_v7 }
 0x9d0   :  { %v1922_v12 = vadd.f32 %v2995_v57, %v2557_v61  ;;  %v1913_v52 = vpop.f32.mrb[59].mxu0  ;;  %3021 = vmatmul.mubr.bf16.gmra.mrb[68].mxu1 %v1960_v27  ;;  %v1951_v20 = vmax.f32 %v1919_v38, 0.0 }
 0x9d1   :  { %v1914_v24 = vadd.f32 %v2557_v61, %v1913_v52  ;;  %v1949_v26 = vmax.f32 %v1911_v4, 0.0 }
 0x9d2   :  { %v1952_v25 = vmax.f32 %v1922_v12, 0.0 }
 0x9d3   :  { %v1950_v48 = vmax.f32 %v1914_v24, 0.0 }
 0x9d4   :  { %v1962_v55 = vpack.c.bf16 %v1952_v25, %v1951_v20 }
 0x9d5   :  { %v1961_v14 = vpack.c.bf16 %v1950_v48, %v1949_v26  ;;  %v2998_v13 = vpop.f32.mrb[60].mxu0 }
 0x9d6   :  { %v1935_v63 = vadd.f32 %v2998_v13, %v2557_v61  ;;  %v1926_v47 = vpop.f32.mrb[61].mxu0 }
 0x9d7   :  { %v1927_v53 = vadd.f32 %v2557_v61, %v1926_v47  ;;  %v2999_v56 = vpop.f32.mrb[62].mxu0  ;;  %3024 = vmatprep.mubr.bf16.mxu1 %v1961_v14 }
 0x9d8   :  { %v1938_v5 = vadd.f32 %v2999_v56, %v2557_v61  ;;  %v1929_v40 = vpop.f32.mrb[63].mxu0  ;;  %3025 = vmatmul.mubr.bf16.gmra.mrb[72].mxu1 %v1962_v55  ;;  %v1955_v28 = vmax.f32 %v1935_v63, 0.0 }
 0x9d9   :  { %v1930_v62 = vadd.f32 %v2557_v61, %v1929_v40  ;;  %v1953_v33 = vmax.f32 %v1927_v53, 0.0  ;;  %v3157_v61 = vld [vmem:[%s4360_s20 + $0x10] sm:$0xff]  }
 0x9da   :  { %v1956_v6 = vmax.f32 %v1938_v5, 0.0  ;;  %3057 = vmatpush3.bf16.msra.mxu1 %v3157_v61  ;;  %v3161_v61 = vld [vmem:[%s4360_s20 + $0x30] sm:$0xff]  }
 0x9db   :  { %v1954_v41 = vmax.f32 %v1930_v62, 0.0  ;;  %3058 = vmatprep.subr.bf16.mxu1 %v3258_v50 }
 0x9dc   :  { %v1964_v18 = vpack.c.bf16 %v1956_v6, %v1955_v28 }
 0x9dd   :  { %v1963_v45 = vpack.c.bf16 %v1954_v41, %v1953_v33 }
 0x9de   :  { %3059 = vmatpush3.bf16.msra.mxu1 %v3158_v31  ;;  %v3162_v31 = vld [vmem:[%s4360_s20 + $0x38] sm:$0xff]  }
 0x9df   :  { %3028 = vmatprep.mubr.bf16.mxu1 %v1963_v45  ;;  %3060 = vmatprep.subr.bf16.mxu1 %v3258_v50 }
 0x9e0   :  { %3029 = vmatmul.mubr.bf16.gmra.mrb[76].mxu1 %v1964_v18 }
 0x9e1   :  { %3068 = vmatprep.mubr.msk.bf16.mxu1 %vm3259_vm2, %v3258_v50 }
 0x9e2   :  { %3061 = vmatpush3.bf16.msra.mxu1 %v3159_v9  ;;  %v3163_v9 = vld [vmem:[%s4363_s22] sm:$0xff]  }
 0x9e3   :  { %3062 = vmatprep.subr.bf16.mxu1 %v3258_v50 }
 0x9e6   :  { %3063 = vmatpush3.bf16.msra.mxu1 %v3160_v37  ;;  %v3164_v37 = vld [vmem:[%s4363_s22 + $0x8] sm:$0xff]  }
 0x9e7   :  { %3064 = vmatprep.subr.bf16.mxu1 %v3258_v50 }
 0x9ea   :  { %3065 = vmatpush3.bf16.msra.mxu1 %v3161_v61 }
 0x9eb   :  { %3066 = vmatprep.subr.bf16.mxu1 %v3258_v50 }
 0x9ee   :  { %3067 = vmatpush3.bf16.msra.mxu1 %v3162_v31 }
 0xa9b   :  { %v3018_v3 = vpop.f32.mrb[64].mxu1 }
 0xa9c   :  { %v2079_v30 = vadd.f32 %v3018_v3, %v4211_v21  ;;  %v2070_v46 = vpop.f32.mrb[65].mxu1  ;;  %v3166_v3 = vld [vmem:[%s4363_s22 + $0x18] sm:$0xff]  }
 0xa9d   :  { %v2071_v1 = vadd.f32 %v4211_v21, %v2070_v46  ;;  %v3019_v10 = vpop.f32.mrb[66].mxu1  ;;  %v3168_v46 = vld [vmem:[%s4363_s22 + $0x28] sm:$0xff]  }
 0xa9e   :  { %2135 = vst [vmem:[%s4362_s24 + $0x10] sm:$0xff] %v2079_v30  ;;  %v2082_v34 = vadd.f32 %v3019_v10, %v4211_v21  ;;  %v2073_v60 = vpop.f32.mrb[67].mxu1  ;;  %v2153_v32 = vmax.f32 %v2079_v30, 0.0  ;;  %v3167_v30 = vld [vmem:[%s4363_s22 + $0x20] sm:$0xff]  }
 0xa9f   :  { %2133 = vst [vmem:[%s4362_s24] sm:$0xff] %v2071_v1  ;;  %v2074_v35 = vadd.f32 %v4211_v21, %v2073_v60  ;;  %v2151_v42 = vmax.f32 %v2071_v1, 0.0  ;;  %v2227_v1 = vpop.permute.xlu0 %2226 }
 0xaa0   :  { %2136 = vst [vmem:[%s4362_s24 + $0x18] sm:$0xff] %v2082_v34  ;;  %v2154_v39 = vmax.f32 %v2082_v34, 0.0  ;;  %v2232_v34 = vpop.permute.xlu1 %2231 }
 0xaa1   :  { %2134 = vst [vmem:[%s4362_s24 + $0x8] sm:$0xff] %v2074_v35  ;;  %v2152_v0 = vmax.f32 %v2074_v35, 0.0 }
 0xaa2   :  { %v2168_v59 = vpack.c.bf16 %v2154_v39, %v2153_v32 }
 0xaa3   :  { %v2167_v2 = vpack.c.bf16 %v2152_v0, %v2151_v42  ;;  %v3022_v49 = vpop.f32.mrb[68].mxu1 }
 0xaa4   :  { %v2095_v54 = vadd.f32 %v3022_v49, %v4211_v21  ;;  %v2086_v8 = vpop.f32.mrb[69].mxu1  ;;  %v2576_v49 = vld [vmem:[%s4364_s21] ss:$0 sm:$0xff] }
 0xaa5   :  { %v2087_v58 = vadd.f32 %v4211_v21, %v2086_v8  ;;  %v3023_v29 = vpop.f32.mrb[70].mxu1  ;;  %3033 = vmatpush3.bf16.msra.mxu0 %v2167_v2  ;;  %v3170_v2 = vld [vmem:[%s4363_s22 + $0x38] sm:$0xff]  }
 0xaa6   :  { %2139 = vst [vmem:[%s4362_s24 + $0x30] sm:$0xff] %v2095_v54  ;;  %v2098_v44 = vadd.f32 %v3023_v29, %v4211_v21  ;;  %v2089_v19 = vpop.f32.mrb[71].mxu1  ;;  %3034 = vmatprep.subr.bf16.mxu0 %v3258_v50  ;;  %v2157_v27 = vmax.f32 %v2095_v54, 0.0 }
 0xaa7   :  { %2137 = vst [vmem:[%s4362_s24 + $0x20] sm:$0xff] %v2087_v58  ;;  %v2090_v15 = vadd.f32 %v4211_v21, %v2089_v19  ;;  %v2155_v36 = vmax.f32 %v2087_v58, 0.0 }
 0xaa8   :  { %2140 = vst [vmem:[%s4362_s24 + $0x38] sm:$0xff] %v2098_v44  ;;  %v2158_v7 = vmax.f32 %v2098_v44, 0.0 }
 0xaa9   :  { %2138 = vst [vmem:[%s4362_s24 + $0x28] sm:$0xff] %v2090_v15  ;;  %v2156_v38 = vmax.f32 %v2090_v15, 0.0  ;;  %3035 = vmatpush3.bf16.msra.mxu0 %v2168_v59  ;;  %v3169_v59 = vld [vmem:[%s4363_s22 + $0x30] sm:$0xff]  }
 0xaaa   :  { %v2170_v17 = vpack.c.bf16 %v2158_v7, %v2157_v27  ;;  %3036 = vmatprep.subr.bf16.mxu0 %v3258_v50 }
 0xaab   :  { %v2169_v4 = vpack.c.bf16 %v2156_v38, %v2155_v36  ;;  %v3026_v57 = vpop.f32.mrb[72].mxu1 }
 0xaac   :  { %v2111_v12 = vadd.f32 %v3026_v57, %v4211_v21  ;;  %v2102_v52 = vpop.f32.mrb[73].mxu1 }
 0xaad   :  { %v2103_v24 = vadd.f32 %v4211_v21, %v2102_v52  ;;  %v3027_v20 = vpop.f32.mrb[74].mxu1  ;;  %3037 = vmatpush3.bf16.msra.mxu0 %v2169_v4 }
 0xaae   :  { %2143 = vst [vmem:[%s4362_s24 + $0x50] sm:$0xff] %v2111_v12  ;;  %v2114_v25 = vadd.f32 %v3027_v20, %v4211_v21  ;;  %v2105_v26 = vpop.f32.mrb[75].mxu1  ;;  %3038 = vmatprep.subr.bf16.mxu0 %v3258_v50  ;;  %v2161_v55 = vmax.f32 %v2111_v12, 0.0 }
 0xaaf   :  { %2141 = vst [vmem:[%s4362_s24 + $0x40] sm:$0xff] %v2103_v24  ;;  %v2106_v48 = vadd.f32 %v4211_v21, %v2105_v26  ;;  %v2159_v13 = vmax.f32 %v2103_v24, 0.0 }
 0xab0   :  { %2144 = vst [vmem:[%s4362_s24 + $0x58] sm:$0xff] %v2114_v25  ;;  %v2162_v14 = vmax.f32 %v2114_v25, 0.0 }
 0xab1   :  { %2142 = vst [vmem:[%s4362_s24 + $0x48] sm:$0xff] %v2106_v48  ;;  %v2160_v63 = vmax.f32 %v2106_v48, 0.0  ;;  %3039 = vmatpush3.bf16.msra.mxu0 %v2170_v17 }
 0xab2   :  { %v2172_v47 = vpack.c.bf16 %v2162_v14, %v2161_v55  ;;  %3040 = vmatprep.subr.bf16.mxu0 %v3258_v50 }
 0xab3   :  { %v2171_v53 = vpack.c.bf16 %v2160_v63, %v2159_v13  ;;  %v3030_v56 = vpop.f32.mrb[76].mxu1 }
 0xab4   :  { %v2127_v5 = vadd.f32 %v3030_v56, %v4211_v21  ;;  %v2118_v40 = vpop.f32.mrb[77].mxu1 }
 0xab5   :  { %v2119_v62 = vadd.f32 %v4211_v21, %v2118_v40  ;;  %v3031_v28 = vpop.f32.mrb[78].mxu1  ;;  %3041 = vmatpush3.bf16.msra.mxu0 %v2171_v53 }
 0xab6   :  { %2147 = vst [vmem:[%s4362_s24 + $0x70] sm:$0xff] %v2127_v5  ;;  %v2130_v6 = vadd.f32 %v3031_v28, %v4211_v21  ;;  %v2121_v33 = vpop.f32.mrb[79].mxu1  ;;  %3042 = vmatprep.subr.bf16.mxu0 %v3258_v50  ;;  %v2165_v18 = vmax.f32 %v2127_v5, 0.0 }
 0xab7   :  { %2145 = vst [vmem:[%s4362_s24 + $0x60] sm:$0xff] %v2119_v62  ;;  %v2122_v41 = vadd.f32 %v4211_v21, %v2121_v33  ;;  %v2163_v16 = vmax.f32 %v2119_v62, 0.0  ;;  %v3165_v21 = vld [vmem:[%s4363_s22 + $0x10] sm:$0xff]  }
 0xab8   :  { %2148 = vst [vmem:[%s4362_s24 + $0x78] sm:$0xff] %v2130_v6  ;;  %v2166_v45 = vmax.f32 %v2130_v6, 0.0 }
 0xab9   :  { %2146 = vst [vmem:[%s4362_s24 + $0x68] sm:$0xff] %v2122_v41  ;;  %v2164_v11 = vmax.f32 %v2122_v41, 0.0  ;;  %3043 = vmatpush3.bf16.msra.mxu0 %v2172_v47 }
 0xaba   :  { %v2174_v51 = vpack.c.bf16 %v2166_v45, %v2165_v18  ;;  %3044 = vmatprep.subr.bf16.mxu0 %v3258_v50 }
 0xabb   :  { %v2173_v22 = vpack.c.bf16 %v2164_v11, %v2163_v16 }
 0xabd   :  { %3045 = vmatpush3.bf16.msra.mxu0 %v2173_v22 }
 0xabe   :  { %3046 = vmatprep.subr.bf16.mxu0 %v3258_v50 }
 0xac1   :  { %3047 = vmatpush3.bf16.msra.mxu0 %v2174_v51 }
 0xac2   :  { %3072 = vmatprep.subr.bf16.mxu0 %v3258_v50 }
 0xac4   :  { %3049 = vmatmul.mubr.bf16.vlgmr.msra.gmra.mrb[64].mxu0 %v3154_v23 }
 0xac5   :  { %3088 = vmatprep.mubr.msk.bf16.mxu0 %vm3259_vm2, %v3258_v50  ;;  %3073 = vmatpush3.bf16.msra.mxu0 %v3163_v9 }
 0xac6   :  { %3074 = vmatprep.subr.bf16.mxu0 %v3258_v50 }
 0xac9   :  { %3075 = vmatpush3.bf16.msra.mxu0 %v3164_v37 }
 0xaca   :  { %3076 = vmatprep.subr.bf16.mxu0 %v3258_v50 }
 0xacd   :  { %3077 = vmatpush3.bf16.msra.mxu0 %v3165_v21 }
 0xace   :  { %3078 = vmatprep.subr.bf16.mxu0 %v3258_v50 }
 0xad1   :  { %3079 = vmatpush3.bf16.msra.mxu0 %v3166_v3 }
 0xad2   :  { %3080 = vmatprep.subr.bf16.mxu0 %v3258_v50 }
 0xad5   :  { %3081 = vmatpush3.bf16.msra.mxu0 %v3167_v30 }
 0xad6   :  { %3082 = vmatprep.subr.bf16.mxu0 %v3258_v50 }
 0xad9   :  { %3083 = vmatpush3.bf16.msra.mxu0 %v3168_v46 }
 0xada   :  { %3084 = vmatprep.subr.bf16.mxu0 %v3258_v50 }
 0xadd   :  { %3085 = vmatpush3.bf16.msra.mxu0 %v3169_v59 }
 0xade   :  { %3086 = vmatprep.subr.bf16.mxu0 %v3258_v50  ;;  %v2585_v50 = vld [vmem:[%s4365_s23] ss:$0 sm:$0xff] }
 0xae1   :  { %3087 = vmatpush3.bf16.msra.mxu0 %v3170_v2 }
 0xb97   :  { %v2215_v10 = vpop.f32.mrb[64].mxu0 }
 0xb98   :  { %v3050_v60 = vpop.f32.mrb[65].mxu0  ;;  %v2234_v32 = vmul.f32 %v2227_v1, %v2215_v10 }
 0xb99   :  { %v2218_v35 = vpop.f32.mrb[66].mxu0 }
 0xb9a   :  { %v2235_v39 = vmul.f32 %v2232_v34, %v2218_v35  ;;  %v3051_v42 = vpop.f32.mrb[67].mxu0 }
 0xb9c   :  { %v2236_v0 = vpack.c.bf16 %v2235_v39, %v2234_v32 }
 0xb9e   :  { %3069 = vmatmul.mubr.bf16.vlgmr.msra.gmra.mrb[80].mxu1 %v2236_v0 }
 0xc71   :  { %v2342_v54 = vpop.f32.mrb[80].mxu1 }
 0xc72   :  { %v3070_v8 = vpop.f32.mrb[81].mxu1  ;;  %v2343_v29 = vadd.f32 %v2576_v49, %v2342_v54 }
 0xc73   :  { %v2345_v58 = vpop.f32.mrb[82].mxu1 }
 0xc74   :  { %v2346_v44 = vadd.f32 %v2576_v49, %v2345_v58  ;;  %v3071_v19 = vpop.f32.mrb[83].mxu1 }
 0xc76   :  { %v2349_v15 = vpack.c.bf16 %v2346_v44, %v2343_v29 }
 0xc78   :  { %3089 = vmatmul.mubr.bf16.vlgmr.msra.gmra.mrb[68].mxu0 %v2349_v15 }
 0xd4b   :  { %v2455_v27 = vpop.f32.mrb[68].mxu0 }
 0xd4c   :  { %v2456_v7 = vadd.f32 %v2585_v50, %v2455_v27  ;;  %v3090_v36 = vpop.f32.mrb[69].mxu0 }
 0xd4d   :  { %v2458_v38 = vpop.f32.mrb[70].mxu0 }
 0xd4e   :  { %v2459_v17 = vadd.f32 %v2585_v50, %v2458_v38  ;;  %v3091_v4 = vpop.f32.mrb[71].mxu0  ;;  %v2465_v57 = vsel %vm2462_vm3, %v2456_v7, -1e+30 }
 0xd4f   :  { %2467 = vmax.xlane.f32.xlu1 %v2465_v57 }
 0xd50   :  { %v2466_v12 = vsel %vm2462_vm3, %v2459_v17, -1e+30 }
 0xd51   :  { %2469 = vmax.xlane.f32.xlu0 %v2466_v12 }
 0xddc   :  { %v2468_v52 = vpop.xlane.xlu1 %2467 }
 0xddd   :  { %v2471_v24 = vsub.f32 %v2465_v57, %v2468_v52 }
 0xdde   :  { %v2470_v20 = vpop.xlane.xlu0 %2469 }
 0xddf   :  { %v2473_v25 = vmul.f32 1.442695, %v2471_v24  ;;  %v2472_v26 = vsub.f32 %v2466_v12, %v2470_v20 }
 0xde1   :  { %3235 = vpow2.f32 %v2473_v25  ;;  %v2475_v48 = vmul.f32 1.442695, %v2472_v26 }
 0xde3   :  { %3237 = vpow2.f32 %v2475_v48 }
 0xdeb   :  { %v3236_v55 = vpop.eup %3235 }
 0xdec   :  { %2477 = vadd.xlane.f32.xlu1 %v3236_v55 }
 0xded   :  { %v3238_v43 = vpop.eup %3237 }
 0xdf0   :  { %2479 = vadd.xlane.f32.xlu1 %v3238_v43 }
 0xe79   :  { %v2478_v14 = vpop.xlane.xlu1 %2477 }
 0xe7a   :  { %3239 = vlog2.f32 %v2478_v14 }
 0xe7d   :  { %v2480_v13 = vpop.xlane.xlu1 %2479 }
 0xe7e   :  { %3241 = vlog2.f32 %v2480_v13 }
 0xe84   :  { %v3240_v63 = vpop.eup %3239 }
 0xe85   :  { %v2482_v47 = vmul.f32 0.6931472, %v3240_v63 }
 0xe87   :  { %v2485_v53 = vadd.f32 %v2482_v47, %v2468_v52 }
 0xe88   :  { %v3242_v56 = vpop.eup %3241 }
 0xe89   :  { %v2487_v5 = vsub.f32 %v2465_v57, %v2485_v53  ;;  %v2484_v40 = vmul.f32 0.6931472, %v3242_v56 }
 0xe8b   :  { %2489 = vst [vmem:[%s4366_s25] sm:$0xff] %v2487_v5  ;;  %v2486_v62 = vadd.f32 %v2484_v40, %v2470_v20 }
 0xe8d   :  { %v2488_v28 = vsub.f32 %v2466_v12, %v2486_v62 }
 0xe8f   :  { %2490 = vst [vmem:[%s4366_s25 + $0x8] sm:$0xff] %v2488_v28 }

</bundles_post_ra>
